<compile_context>
chip_gen: v7x
topology: tpu7x:2x2x1
jax: 0.10.0
libtpu: 0.0.40
codegen_flags: <defaults>
</compile_context>

<pallas_src>
import functools

import jax
import jax.numpy as jnp
from jax.experimental import pallas as pl
from jax.experimental.pallas import tpu as pltpu


def _round_up(x, m):
    return (x + m - 1) // m * m


def _make_kernel(n_layers, seq_len, b_pad, hidden_dim):
    S, Bp, H = seq_len, b_pad, hidden_dim
    NB = 4 * H  # fused gate lanes: [ r | z | n | z-dup ]; h lives in lanes [2H:3H]

    def tree_reduce(op, xs):
        xs = list(xs)
        while len(xs) > 1:
            nxt = [op(xs[i], xs[i + 1]) for i in range(0, len(xs) - 1, 2)]
            if len(xs) % 2:
                nxt.append(xs[-1])
            xs = nxt
        return xs[0]

    def kernel(*refs):
        # ---- parse refs: x, then 4 fused refs per GRU layer, 3 head refs, output ----
        idx = 0
        x_ref = refs[idx]; idx += 1                              # (S*Bp, E) bf16, time-major
        layers = []
        for _ in range(n_layers):
            layers.append(refs[idx:idx + 4]); idx += 4           # w_ih, w_hh, b_ih, b_hh
        w_nh_ref, w_lc_ref, b_lc_ref = refs[idx:idx + 3]; idx += 3
        out_ref = refs[idx]                                      # (Bp, Op) f32, lane-dense

        f32, bf16 = jnp.float32, jnp.bfloat16

        # ---- hoisted layer-0 input-side gates for ALL timesteps: one MXU matmul ----
        w_ih0, _, b_ih0, _ = layers[0]
        gi0 = jnp.dot(x_ref[...], w_ih0[...],
                      preferred_element_type=f32) + b_ih0[...]   # (S*Bp, NB)

        def gru_step(l, gi_t, hc):
            _, w_hh, _, b_hh = layers[l]
            gh = jnp.dot(hc.astype(bf16), w_hh[...],
                         preferred_element_type=f32) + b_hh[...]          # (Bp, NB)
            s = jax.nn.sigmoid(gi_t + gh)                 # lanes: [ r | z | * | z ]
            r_al = pltpu.roll(s, 2 * H, axis=1)           # lanes [2H:3H] <- r  (shift = NB/2)
            n = jnp.tanh(gi_t + r_al * gh)                # lanes [2H:3H] = n
            z_al = pltpu.roll(s, H, axis=1)               # lanes [2H:3H] <- z  (dup at +-H)
            return n + z_al * (hc - n)                    # lanes [2H:3H] = h_t; rest bounded junk

        h = [jnp.zeros((Bp, NB), f32) for _ in range(n_layers)]
        outs = []
        # ---- wavefront over (t, layer): layer l step t issued right after layer l-1 step t,
        #      consuming h_{l-1,t} straight from vregs (no inter-layer scratch) ----
        for t in range(S):
            gi_t = gi0[t * Bp:(t + 1) * Bp, :]                   # sublane-aligned full-vreg slice
            for l in range(n_layers):
                if l > 0:
                    w_ih, _, b_ih, _ = layers[l]
                    gi_t = jnp.dot(h[l - 1].astype(bf16), w_ih[...],
                                   preferred_element_type=f32) + b_ih[...]
                h[l] = gru_step(l, gi_t, h[l])
            outs.append(h[n_layers - 1])

        hidden = h[n_layers - 1]                                 # (Bp, NB), real at [2H:3H]

        # ---- attention: masked batched scores + tree-reduced softmax stats / context sum ----
        lane = jax.lax.broadcasted_iota(jnp.int32, (Bp, NB), 1)
        hidden_m = jnp.where((lane >= 2 * H) & (lane < 3 * H), hidden, 0.0)
        s_list = [jnp.sum(o * hidden_m, axis=-1, keepdims=True) for o in outs]  # S x (Bp,1)
        m = tree_reduce(jnp.maximum, s_list)
        e_list = [jnp.exp(sv - m) for sv in s_list]
        inv = pl.reciprocal(tree_reduce(jnp.add, e_list), approx=True)          # EUP slot
        ctx = tree_reduce(jnp.add, [(e * inv) * o for e, o in zip(e_list, outs)])  # (Bp, NB)

        # ---- concat head: one fused (Bp, 2*NB) @ (2*NB, 128) dot, relu, lane-dense store ----
        cat = jnp.concatenate([ctx, hidden], axis=-1).astype(bf16)
        ht = jnp.maximum(jnp.dot(cat, w_nh_ref[...], preferred_element_type=f32), 0.0)
        out_ref[...] = jnp.dot(ht.astype(bf16), w_lc_ref[...],
                               preferred_element_type=f32) + b_lc_ref[...]

    return kernel


def init_params(key, vocab_size, embedding_dim, hidden_dim, output_dim, n_layers):
    """Deterministic parameter init in PyTorch-native shapes."""
    H = hidden_dim
    ks = iter(jax.random.split(key, 6 + 4 * n_layers))
    u = lambda k, shape, s: jax.random.uniform(k, shape, jnp.float32, -s, s)

    params = {
        "embedding": jax.random.normal(next(ks), (vocab_size, embedding_dim), jnp.float32) * 0.5,
        "w_ih": [], "w_hh": [], "b_ih": [], "b_hh": [],
    }
    kgru = 1.0 / jnp.sqrt(H)
    for l in range(n_layers):
        in_dim = embedding_dim if l == 0 else H
        params["w_ih"].append(u(next(ks), (3 * H, in_dim), kgru))
        params["w_hh"].append(u(next(ks), (3 * H, H), kgru))
        params["b_ih"].append(u(next(ks), (3 * H,), kgru))
        params["b_hh"].append(u(next(ks), (3 * H,), kgru))
    params["w_new_ht"] = u(next(ks), (128, 2 * H), 1.0 / jnp.sqrt(2.0 * H))      # no bias
    params["w_label_concat"] = u(next(ks), (output_dim, 128), 1.0 / jnp.sqrt(128.0))
    params["b_label_concat"] = u(next(ks), (output_dim,), 1.0 / jnp.sqrt(128.0))
    return params


def prepare_params(params, n_layers):
    """One-time repacking into the kernel's fused [r|z|n|z] 4H-lane layout.

    Hoisted out of the per-call path so per-call work is just gather + pad + pallas_call.
    Weights are stored bf16 (MXU operands), biases f32.
    """
    H = params["w_hh"][0].shape[1]
    NB = 4 * H

    def pack_cols(m):                      # (rows, 3H) -> (rows, 4H) = [r | z | n | z]
        r, z, n = m[:, :H], m[:, H:2 * H], m[:, 2 * H:3 * H]
        return jnp.concatenate([r, z, n, z], axis=-1)

    def embed_rows(m):                     # (H, cols) -> (NB, cols), real rows at [2H:3H]
        out = jnp.zeros((NB, m.shape[1]), m.dtype)
        return out.at[2 * H:3 * H, :].set(m)

    packed = [params["embedding"].astype(jnp.float32)]
    for l in range(n_layers):
        w_ih_t = pack_cols(params["w_ih"][l].T)            # (in_dim, NB)
        if l > 0:
            w_ih_t = embed_rows(w_ih_t)                    # (NB, NB): zero rows off [2H:3H]
        w_hh_t = embed_rows(pack_cols(params["w_hh"][l].T))
        packed += [
            w_ih_t.astype(jnp.bfloat16),
            w_hh_t.astype(jnp.bfloat16),
            pack_cols(params["b_ih"][l].reshape(1, -1)).astype(jnp.float32),
            pack_cols(params["b_hh"][l].reshape(1, -1)).astype(jnp.float32),
        ]

    w_nh = params["w_new_ht"]                              # (128, 2H)
    D = w_nh.shape[0]
    w_nh_p = jnp.zeros((2 * NB, D), jnp.float32)
    w_nh_p = w_nh_p.at[2 * H:3 * H, :].set(w_nh[:, :H].T)          # ctx half
    w_nh_p = w_nh_p.at[NB + 2 * H:NB + 3 * H, :].set(w_nh[:, H:].T)  # hidden half

    O = params["w_label_concat"].shape[0]
    Op = _round_up(O, 128)                                 # lane-dense output
    w_lc_p = jnp.zeros((D, Op), jnp.float32).at[:, :O].set(params["w_label_concat"].T)
    b_lc_p = jnp.zeros((1, Op), jnp.float32).at[:, :O].set(params["b_label_concat"])

    packed += [w_nh_p.astype(jnp.bfloat16), w_lc_p.astype(jnp.bfloat16), b_lc_p]
    return tuple(packed)


@functools.partial(jax.jit, static_argnums=(2, 3))
def global_attention_pallas(input_ids, packed, n_layers, output_dim):
    emb = packed[0]                                        # (V, E) f32
    kernel_params = packed[1:]
    B, S = input_ids.shape
    E = emb.shape[1]
    NB = kernel_params[1].shape[0]                         # w_hh0 is (NB, NB)
    H = NB // 4
    Bp = _round_up(B, 8)                                   # sublane-aligned per-step row blocks
    Op = kernel_params[-1].shape[1]                        # padded (lane-dense) output width

    # glue: embedding gather + permute to time-major + batch pad + flatten + bf16 cast
    x = jnp.take(emb, input_ids, axis=0)                   # (B, S, E)
    x = jnp.transpose(x, (1, 0, 2))                        # (S, B, E)
    x = jnp.pad(x, ((0, 0), (0, Bp - B), (0, 0)))
    x_flat = x.reshape(S * Bp, E).astype(jnp.bfloat16)

    kernel = _make_kernel(n_layers, S, Bp, H)
    out = pl.pallas_call(
        kernel,
        out_shape=jax.ShapeDtypeStruct((Bp, Op), jnp.float32),
        in_specs=[pl.BlockSpec(memory_space=pltpu.MemorySpace.VMEM)] * (1 + len(kernel_params)),
        out_specs=pl.BlockSpec(memory_space=pltpu.MemorySpace.VMEM),
    )(x_flat, *kernel_params)
    return out[:B, :output_dim]                            # drop padded batch rows / lanes


def reference_forward(input_ids, params, n_layers):
    """Pure-JAX f32 mirror of the PyTorch forward (concat=True, eval mode)."""
    emb = params["embedding"]
    x = jnp.take(emb, input_ids, axis=0)               # (B, S, E)
    x = jnp.transpose(x, (1, 0, 2))                    # (S, B, E)
    S, B, _ = x.shape
    H = params["w_hh"][0].shape[1]
    layer_in = x
    h = None
    for l in range(n_layers):
        w_ih, w_hh = params["w_ih"][l], params["w_hh"][l]
        b_ih, b_hh = params["b_ih"][l], params["b_hh"][l]
        h = jnp.zeros((B, H), jnp.float32)
        outs = []
        for t in range(S):
            x_t = layer_in[t]
            gi = x_t @ w_ih.T + b_ih
            gh = h @ w_hh.T + b_hh
            r = jax.nn.sigmoid(gi[:, 0:H] + gh[:, 0:H])
            z = jax.nn.sigmoid(gi[:, H:2 * H] + gh[:, H:2 * H])
            n = jnp.tanh(gi[:, 2 * H:] + r * gh[:, 2 * H:])
            h = (1.0 - z) * n + z * h
            outs.append(h)
        layer_in = jnp.stack(outs, axis=0)
    output = jnp.transpose(layer_in, (1, 0, 2))        # (B, S, H)
    hidden = h                                         # (B, H)
    att = jnp.einsum("bsh,bh->bs", output, hidden)
    alpha = jax.nn.softmax(att, axis=1)
    ctx = jnp.einsum("bsh,bs->bh", output, alpha)
    cat = jnp.concatenate([ctx, hidden], axis=1)
    ht = jax.nn.relu(cat @ params["w_new_ht"].T)
    return ht @ params["w_label_concat"].T + params["b_label_concat"]


if __name__ == "__main__":
    vocab_size, embedding_dim, hidden_dim, output_dim, n_layers = 32, 16, 32, 8, 2
    batch, seq_len = 4, 8

    key = jax.random.PRNGKey(0)
    k_params, k_ids = jax.random.split(key)
    params = init_params(k_params, vocab_size, embedding_dim, hidden_dim,
                         output_dim, n_layers)
    input_ids = jax.random.randint(k_ids, (batch, seq_len), 0, vocab_size,
                                   dtype=jnp.int32)

    packed = prepare_params(params, n_layers)          # one-time repacking (off hot path)
    out = global_attention_pallas(input_ids, packed, n_layers, output_dim)
    out = jax.block_until_ready(out)

    ref = jax.block_until_ready(reference_forward(input_ids, params, n_layers))
    assert out.shape == (batch, output_dim)
    assert bool(jnp.all(jnp.isfinite(out)))
    assert bool(jnp.allclose(out, ref, atol=2e-2, rtol=2e-2)), (
        f"mismatch: max abs diff {float(jnp.max(jnp.abs(out - ref)))}")
    print("KERNEL_OK")
</pallas_src>

<mosaic_0001>
module attributes {stable_mosaic.version = 11 : i64} {
  func.func @kernel(%arg0: memref<64x16xbf16, #tpu.memory_space<vmem>>, %arg1: memref<16x128xbf16, #tpu.memory_space<vmem>>, %arg2: memref<128x128xbf16, #tpu.memory_space<vmem>>, %arg3: memref<1x128xf32, #tpu.memory_space<vmem>>, %arg4: memref<1x128xf32, #tpu.memory_space<vmem>>, %arg5: memref<128x128xbf16, #tpu.memory_space<vmem>>, %arg6: memref<128x128xbf16, #tpu.memory_space<vmem>>, %arg7: memref<1x128xf32, #tpu.memory_space<vmem>>, %arg8: memref<1x128xf32, #tpu.memory_space<vmem>>, %arg9: memref<256x128xbf16, #tpu.memory_space<vmem>>, %arg10: memref<128x128xbf16, #tpu.memory_space<vmem>>, %arg11: memref<1x128xf32, #tpu.memory_space<vmem>>, %arg12: memref<8x128xf32, #tpu.memory_space<vmem>>) attributes {dimension_semantics = [], scalar_prefetch = 0 : i64, scratch_operands = 0 : i64, tpu.core_type = #tpu.core_type<tc>} {
    %c0 = arith.constant 0 : index
    %c0_0 = arith.constant 0 : index
    %0 = vector.load %arg0[%c0, %c0_0] : memref<64x16xbf16, #tpu.memory_space<vmem>>, vector<64x16xbf16>
    %c0_1 = arith.constant 0 : index
    %c0_2 = arith.constant 0 : index
    %1 = vector.load %arg1[%c0_1, %c0_2] : memref<16x128xbf16, #tpu.memory_space<vmem>>, vector<16x128xbf16>
    %cst = arith.constant dense<0.000000e+00> : vector<64x128xf32>
    %2 = tpu.matmul %0, %1, %cst {dimension_numbers = #tpu.dot_dimension_numbers<[1], [0], [0], [1], [0, 0, 1, 1], [], []>} : vector<64x16xbf16>, vector<16x128xbf16>, vector<64x128xf32> -> vector<64x128xf32>
    %c0_3 = arith.constant 0 : index
    %c0_4 = arith.constant 0 : index
    %3 = vector.load %arg3[%c0_3, %c0_4] : memref<1x128xf32, #tpu.memory_space<vmem>>, vector<1x128xf32>
    %4 = vector.broadcast %3 : vector<1x128xf32> to vector<64x128xf32>
    %5 = arith.addf %2, %4 : vector<64x128xf32>
    %cst_5 = arith.constant 0.000000e+00 : f32
    %6 = vector.broadcast %cst_5 : f32 to vector<8x128xf32>
    %cst_6 = arith.constant 0.000000e+00 : f32
    %7 = vector.broadcast %cst_6 : f32 to vector<8x128xf32>
    %8 = vector.extract_strided_slice %5 {offsets = [0, 0], sizes = [8, 128], strides = [1, 1]} : vector<64x128xf32> to vector<8x128xf32>
    %9 = arith.truncf %6 : vector<8x128xf32> to vector<8x128xbf16>
    %c0_7 = arith.constant 0 : index
    %c0_8 = arith.constant 0 : index
    %10 = vector.load %arg2[%c0_7, %c0_8] : memref<128x128xbf16, #tpu.memory_space<vmem>>, vector<128x128xbf16>
    %cst_9 = arith.constant dense<0.000000e+00> : vector<8x128xf32>
    %11 = tpu.matmul %9, %10, %cst_9 {dimension_numbers = #tpu.dot_dimension_numbers<[1], [0], [0], [1], [0, 0, 1, 1], [], []>} : vector<8x128xbf16>, vector<128x128xbf16>, vector<8x128xf32> -> vector<8x128xf32>
    %c0_10 = arith.constant 0 : index
    %c0_11 = arith.constant 0 : index
    %12 = vector.load %arg4[%c0_10, %c0_11] : memref<1x128xf32, #tpu.memory_space<vmem>>, vector<1x128xf32>
    %13 = vector.broadcast %12 : vector<1x128xf32> to vector<8x128xf32>
    %14 = arith.addf %11, %13 : vector<8x128xf32>
    %15 = arith.addf %8, %14 : vector<8x128xf32>
    %16 = arith.negf %15 : vector<8x128xf32>
    %17 = math.exp %16 : vector<8x128xf32>
    %cst_12 = arith.constant 1.000000e+00 : f32
    %18 = vector.broadcast %cst_12 : f32 to vector<8x128xf32>
    %19 = arith.addf %18, %17 : vector<8x128xf32>
    %20 = arith.divf %18, %19 : vector<8x128xf32>
    %c64_i32 = arith.constant 64 : i32
    %21 = tpu.dynamic_rotate %20 by %c64_i32 dim 1 : vector<8x128xf32>, i32 -> vector<8x128xf32>
    %22 = arith.mulf %21, %14 : vector<8x128xf32>
    %23 = arith.addf %8, %22 : vector<8x128xf32>
    %24 = math.tanh %23 : vector<8x128xf32>
    %c32_i32 = arith.constant 32 : i32
    %25 = tpu.dynamic_rotate %20 by %c32_i32 dim 1 : vector<8x128xf32>, i32 -> vector<8x128xf32>
    %26 = arith.subf %6, %24 : vector<8x128xf32>
    %27 = arith.mulf %25, %26 : vector<8x128xf32>
    %28 = arith.addf %24, %27 : vector<8x128xf32>
    %29 = arith.truncf %28 : vector<8x128xf32> to vector<8x128xbf16>
    %c0_13 = arith.constant 0 : index
    %c0_14 = arith.constant 0 : index
    %30 = vector.load %arg5[%c0_13, %c0_14] : memref<128x128xbf16, #tpu.memory_space<vmem>>, vector<128x128xbf16>
    %cst_15 = arith.constant dense<0.000000e+00> : vector<8x128xf32>
    %31 = tpu.matmul %29, %30, %cst_15 {dimension_numbers = #tpu.dot_dimension_numbers<[1], [0], [0], [1], [0, 0, 1, 1], [], []>} : vector<8x128xbf16>, vector<128x128xbf16>, vector<8x128xf32> -> vector<8x128xf32>
    %c0_16 = arith.constant 0 : index
    %c0_17 = arith.constant 0 : index
    %32 = vector.load %arg7[%c0_16, %c0_17] : memref<1x128xf32, #tpu.memory_space<vmem>>, vector<1x128xf32>
    %33 = vector.broadcast %32 : vector<1x128xf32> to vector<8x128xf32>
    %34 = arith.addf %31, %33 : vector<8x128xf32>
    %35 = arith.truncf %7 : vector<8x128xf32> to vector<8x128xbf16>
    %c0_18 = arith.constant 0 : index
    %c0_19 = arith.constant 0 : index
    %36 = vector.load %arg6[%c0_18, %c0_19] : memref<128x128xbf16, #tpu.memory_space<vmem>>, vector<128x128xbf16>
    %cst_20 = arith.constant dense<0.000000e+00> : vector<8x128xf32>
    %37 = tpu.matmul %35, %36, %cst_20 {dimension_numbers = #tpu.dot_dimension_numbers<[1], [0], [0], [1], [0, 0, 1, 1], [], []>} : vector<8x128xbf16>, vector<128x128xbf16>, vector<8x128xf32> -> vector<8x128xf32>
    %c0_21 = arith.constant 0 : index
    %c0_22 = arith.constant 0 : index
    %38 = vector.load %arg8[%c0_21, %c0_22] : memref<1x128xf32, #tpu.memory_space<vmem>>, vector<1x128xf32>
    %39 = vector.broadcast %38 : vector<1x128xf32> to vector<8x128xf32>
    %40 = arith.addf %37, %39 : vector<8x128xf32>
    %41 = arith.addf %34, %40 : vector<8x128xf32>
    %42 = arith.negf %41 : vector<8x128xf32>
    %43 = math.exp %42 : vector<8x128xf32>
    %cst_23 = arith.constant 1.000000e+00 : f32
    %44 = vector.broadcast %cst_23 : f32 to vector<8x128xf32>
    %45 = arith.addf %44, %43 : vector<8x128xf32>
    %46 = arith.divf %44, %45 : vector<8x128xf32>
    %c64_i32_24 = arith.constant 64 : i32
    %47 = tpu.dynamic_rotate %46 by %c64_i32_24 dim 1 : vector<8x128xf32>, i32 -> vector<8x128xf32>
    %48 = arith.mulf %47, %40 : vector<8x128xf32>
    %49 = arith.addf %34, %48 : vector<8x128xf32>
    %50 = math.tanh %49 : vector<8x128xf32>
    %c32_i32_25 = arith.constant 32 : i32
    %51 = tpu.dynamic_rotate %46 by %c32_i32_25 dim 1 : vector<8x128xf32>, i32 -> vector<8x128xf32>
    %52 = arith.subf %7, %50 : vector<8x128xf32>
    %53 = arith.mulf %51, %52 : vector<8x128xf32>
    %54 = arith.addf %50, %53 : vector<8x128xf32>
    %55 = vector.extract_strided_slice %5 {offsets = [8, 0], sizes = [8, 128], strides = [1, 1]} : vector<64x128xf32> to vector<8x128xf32>
    %56 = arith.truncf %28 : vector<8x128xf32> to vector<8x128xbf16>
    %c0_26 = arith.constant 0 : index
    %c0_27 = arith.constant 0 : index
    %57 = vector.load %arg2[%c0_26, %c0_27] : memref<128x128xbf16, #tpu.memory_space<vmem>>, vector<128x128xbf16>
    %cst_28 = arith.constant dense<0.000000e+00> : vector<8x128xf32>
    %58 = tpu.matmul %56, %57, %cst_28 {dimension_numbers = #tpu.dot_dimension_numbers<[1], [0], [0], [1], [0, 0, 1, 1], [], []>} : vector<8x128xbf16>, vector<128x128xbf16>, vector<8x128xf32> -> vector<8x128xf32>
    %c0_29 = arith.constant 0 : index
    %c0_30 = arith.constant 0 : index
    %59 = vector.load %arg4[%c0_29, %c0_30] : memref<1x128xf32, #tpu.memory_space<vmem>>, vector<1x128xf32>
    %60 = vector.broadcast %59 : vector<1x128xf32> to vector<8x128xf32>
    %61 = arith.addf %58, %60 : vector<8x128xf32>
    %62 = arith.addf %55, %61 : vector<8x128xf32>
    %63 = arith.negf %62 : vector<8x128xf32>
    %64 = math.exp %63 : vector<8x128xf32>
    %cst_31 = arith.constant 1.000000e+00 : f32
    %65 = vector.broadcast %cst_31 : f32 to vector<8x128xf32>
    %66 = arith.addf %65, %64 : vector<8x128xf32>
    %67 = arith.divf %65, %66 : vector<8x128xf32>
    %c64_i32_32 = arith.constant 64 : i32
    %68 = tpu.dynamic_rotate %67 by %c64_i32_32 dim 1 : vector<8x128xf32>, i32 -> vector<8x128xf32>
    %69 = arith.mulf %68, %61 : vector<8x128xf32>
    %70 = arith.addf %55, %69 : vector<8x128xf32>
    %71 = math.tanh %70 : vector<8x128xf32>
    %c32_i32_33 = arith.constant 32 : i32
    %72 = tpu.dynamic_rotate %67 by %c32_i32_33 dim 1 : vector<8x128xf32>, i32 -> vector<8x128xf32>
    %73 = arith.subf %28, %71 : vector<8x128xf32>
    %74 = arith.mulf %72, %73 : vector<8x128xf32>
    %75 = arith.addf %71, %74 : vector<8x128xf32>
    %76 = arith.truncf %75 : vector<8x128xf32> to vector<8x128xbf16>
    %c0_34 = arith.constant 0 : index
    %c0_35 = arith.constant 0 : index
    %77 = vector.load %arg5[%c0_34, %c0_35] : memref<128x128xbf16, #tpu.memory_space<vmem>>, vector<128x128xbf16>
    %cst_36 = arith.constant dense<0.000000e+00> : vector<8x128xf32>
    %78 = tpu.matmul %76, %77, %cst_36 {dimension_numbers = #tpu.dot_dimension_numbers<[1], [0], [0], [1], [0, 0, 1, 1], [], []>} : vector<8x128xbf16>, vector<128x128xbf16>, vector<8x128xf32> -> vector<8x128xf32>
    %c0_37 = arith.constant 0 : index
    %c0_38 = arith.constant 0 : index
    %79 = vector.load %arg7[%c0_37, %c0_38] : memref<1x128xf32, #tpu.memory_space<vmem>>, vector<1x128xf32>
    %80 = vector.broadcast %79 : vector<1x128xf32> to vector<8x128xf32>
    %81 = arith.addf %78, %80 : vector<8x128xf32>
    %82 = arith.truncf %54 : vector<8x128xf32> to vector<8x128xbf16>
    %c0_39 = arith.constant 0 : index
    %c0_40 = arith.constant 0 : index
    %83 = vector.load %arg6[%c0_39, %c0_40] : memref<128x128xbf16, #tpu.memory_space<vmem>>, vector<128x128xbf16>
    %cst_41 = arith.constant dense<0.000000e+00> : vector<8x128xf32>
    %84 = tpu.matmul %82, %83, %cst_41 {dimension_numbers = #tpu.dot_dimension_numbers<[1], [0], [0], [1], [0, 0, 1, 1], [], []>} : vector<8x128xbf16>, vector<128x128xbf16>, vector<8x128xf32> -> vector<8x128xf32>
    %c0_42 = arith.constant 0 : index
    %c0_43 = arith.constant 0 : index
    %85 = vector.load %arg8[%c0_42, %c0_43] : memref<1x128xf32, #tpu.memory_space<vmem>>, vector<1x128xf32>
    %86 = vector.broadcast %85 : vector<1x128xf32> to vector<8x128xf32>
    %87 = arith.addf %84, %86 : vector<8x128xf32>
    %88 = arith.addf %81, %87 : vector<8x128xf32>
    %89 = arith.negf %88 : vector<8x128xf32>
    %90 = math.exp %89 : vector<8x128xf32>
    %cst_44 = arith.constant 1.000000e+00 : f32
    %91 = vector.broadcast %cst_44 : f32 to vector<8x128xf32>
    %92 = arith.addf %91, %90 : vector<8x128xf32>
    %93 = arith.divf %91, %92 : vector<8x128xf32>
    %c64_i32_45 = arith.constant 64 : i32
    %94 = tpu.dynamic_rotate %93 by %c64_i32_45 dim 1 : vector<8x128xf32>, i32 -> vector<8x128xf32>
    %95 = arith.mulf %94, %87 : vector<8x128xf32>
    %96 = arith.addf %81, %95 : vector<8x128xf32>
    %97 = math.tanh %96 : vector<8x128xf32>
    %c32_i32_46 = arith.constant 32 : i32
    %98 = tpu.dynamic_rotate %93 by %c32_i32_46 dim 1 : vector<8x128xf32>, i32 -> vector<8x128xf32>
    %99 = arith.subf %54, %97 : vector<8x128xf32>
    %100 = arith.mulf %98, %99 : vector<8x128xf32>
    %101 = arith.addf %97, %100 : vector<8x128xf32>
    %102 = vector.extract_strided_slice %5 {offsets = [16, 0], sizes = [8, 128], strides = [1, 1]} : vector<64x128xf32> to vector<8x128xf32>
    %103 = arith.truncf %75 : vector<8x128xf32> to vector<8x128xbf16>
    %c0_47 = arith.constant 0 : index
    %c0_48 = arith.constant 0 : index
    %104 = vector.load %arg2[%c0_47, %c0_48] : memref<128x128xbf16, #tpu.memory_space<vmem>>, vector<128x128xbf16>
    %cst_49 = arith.constant dense<0.000000e+00> : vector<8x128xf32>
    %105 = tpu.matmul %103, %104, %cst_49 {dimension_numbers = #tpu.dot_dimension_numbers<[1], [0], [0], [1], [0, 0, 1, 1], [], []>} : vector<8x128xbf16>, vector<128x128xbf16>, vector<8x128xf32> -> vector<8x128xf32>
    %c0_50 = arith.constant 0 : index
    %c0_51 = arith.constant 0 : index
    %106 = vector.load %arg4[%c0_50, %c0_51] : memref<1x128xf32, #tpu.memory_space<vmem>>, vector<1x128xf32>
    %107 = vector.broadcast %106 : vector<1x128xf32> to vector<8x128xf32>
    %108 = arith.addf %105, %107 : vector<8x128xf32>
    %109 = arith.addf %102, %108 : vector<8x128xf32>
    %110 = arith.negf %109 : vector<8x128xf32>
    %111 = math.exp %110 : vector<8x128xf32>
    %cst_52 = arith.constant 1.000000e+00 : f32
    %112 = vector.broadcast %cst_52 : f32 to vector<8x128xf32>
    %113 = arith.addf %112, %111 : vector<8x128xf32>
    %114 = arith.divf %112, %113 : vector<8x128xf32>
    %c64_i32_53 = arith.constant 64 : i32
    %115 = tpu.dynamic_rotate %114 by %c64_i32_53 dim 1 : vector<8x128xf32>, i32 -> vector<8x128xf32>
    %116 = arith.mulf %115, %108 : vector<8x128xf32>
    %117 = arith.addf %102, %116 : vector<8x128xf32>
    %118 = math.tanh %117 : vector<8x128xf32>
    %c32_i32_54 = arith.constant 32 : i32
    %119 = tpu.dynamic_rotate %114 by %c32_i32_54 dim 1 : vector<8x128xf32>, i32 -> vector<8x128xf32>
    %120 = arith.subf %75, %118 : vector<8x128xf32>
    %121 = arith.mulf %119, %120 : vector<8x128xf32>
    %122 = arith.addf %118, %121 : vector<8x128xf32>
    %123 = arith.truncf %122 : vector<8x128xf32> to vector<8x128xbf16>
    %c0_55 = arith.constant 0 : index
    %c0_56 = arith.constant 0 : index
    %124 = vector.load %arg5[%c0_55, %c0_56] : memref<128x128xbf16, #tpu.memory_space<vmem>>, vector<128x128xbf16>
    %cst_57 = arith.constant dense<0.000000e+00> : vector<8x128xf32>
    %125 = tpu.matmul %123, %124, %cst_57 {dimension_numbers = #tpu.dot_dimension_numbers<[1], [0], [0], [1], [0, 0, 1, 1], [], []>} : vector<8x128xbf16>, vector<128x128xbf16>, vector<8x128xf32> -> vector<8x128xf32>
    %c0_58 = arith.constant 0 : index
    %c0_59 = arith.constant 0 : index
    %126 = vector.load %arg7[%c0_58, %c0_59] : memref<1x128xf32, #tpu.memory_space<vmem>>, vector<1x128xf32>
    %127 = vector.broadcast %126 : vector<1x128xf32> to vector<8x128xf32>
    %128 = arith.addf %125, %127 : vector<8x128xf32>
    %129 = arith.truncf %101 : vector<8x128xf32> to vector<8x128xbf16>
    %c0_60 = arith.constant 0 : index
    %c0_61 = arith.constant 0 : index
    %130 = vector.load %arg6[%c0_60, %c0_61] : memref<128x128xbf16, #tpu.memory_space<vmem>>, vector<128x128xbf16>
    %cst_62 = arith.constant dense<0.000000e+00> : vector<8x128xf32>
    %131 = tpu.matmul %129, %130, %cst_62 {dimension_numbers = #tpu.dot_dimension_numbers<[1], [0], [0], [1], [0, 0, 1, 1], [], []>} : vector<8x128xbf16>, vector<128x128xbf16>, vector<8x128xf32> -> vector<8x128xf32>
    %c0_63 = arith.constant 0 : index
    %c0_64 = arith.constant 0 : index
    %132 = vector.load %arg8[%c0_63, %c0_64] : memref<1x128xf32, #tpu.memory_space<vmem>>, vector<1x128xf32>
    %133 = vector.broadcast %132 : vector<1x128xf32> to vector<8x128xf32>
    %134 = arith.addf %131, %133 : vector<8x128xf32>
    %135 = arith.addf %128, %134 : vector<8x128xf32>
    %136 = arith.negf %135 : vector<8x128xf32>
    %137 = math.exp %136 : vector<8x128xf32>
    %cst_65 = arith.constant 1.000000e+00 : f32
    %138 = vector.broadcast %cst_65 : f32 to vector<8x128xf32>
    %139 = arith.addf %138, %137 : vector<8x128xf32>
    %140 = arith.divf %138, %139 : vector<8x128xf32>
    %c64_i32_66 = arith.constant 64 : i32
    %141 = tpu.dynamic_rotate %140 by %c64_i32_66 dim 1 : vector<8x128xf32>, i32 -> vector<8x128xf32>
    %142 = arith.mulf %141, %134 : vector<8x128xf32>
    %143 = arith.addf %128, %142 : vector<8x128xf32>
    %144 = math.tanh %143 : vector<8x128xf32>
    %c32_i32_67 = arith.constant 32 : i32
    %145 = tpu.dynamic_rotate %140 by %c32_i32_67 dim 1 : vector<8x128xf32>, i32 -> vector<8x128xf32>
    %146 = arith.subf %101, %144 : vector<8x128xf32>
    %147 = arith.mulf %145, %146 : vector<8x128xf32>
    %148 = arith.addf %144, %147 : vector<8x128xf32>
    %149 = vector.extract_strided_slice %5 {offsets = [24, 0], sizes = [8, 128], strides = [1, 1]} : vector<64x128xf32> to vector<8x128xf32>
    %150 = arith.truncf %122 : vector<8x128xf32> to vector<8x128xbf16>
    %c0_68 = arith.constant 0 : index
    %c0_69 = arith.constant 0 : index
    %151 = vector.load %arg2[%c0_68, %c0_69] : memref<128x128xbf16, #tpu.memory_space<vmem>>, vector<128x128xbf16>
    %cst_70 = arith.constant dense<0.000000e+00> : vector<8x128xf32>
    %152 = tpu.matmul %150, %151, %cst_70 {dimension_numbers = #tpu.dot_dimension_numbers<[1], [0], [0], [1], [0, 0, 1, 1], [], []>} : vector<8x128xbf16>, vector<128x128xbf16>, vector<8x128xf32> -> vector<8x128xf32>
    %c0_71 = arith.constant 0 : index
    %c0_72 = arith.constant 0 : index
    %153 = vector.load %arg4[%c0_71, %c0_72] : memref<1x128xf32, #tpu.memory_space<vmem>>, vector<1x128xf32>
    %154 = vector.broadcast %153 : vector<1x128xf32> to vector<8x128xf32>
    %155 = arith.addf %152, %154 : vector<8x128xf32>
    %156 = arith.addf %149, %155 : vector<8x128xf32>
    %157 = arith.negf %156 : vector<8x128xf32>
    %158 = math.exp %157 : vector<8x128xf32>
    %cst_73 = arith.constant 1.000000e+00 : f32
    %159 = vector.broadcast %cst_73 : f32 to vector<8x128xf32>
    %160 = arith.addf %159, %158 : vector<8x128xf32>
    %161 = arith.divf %159, %160 : vector<8x128xf32>
    %c64_i32_74 = arith.constant 64 : i32
    %162 = tpu.dynamic_rotate %161 by %c64_i32_74 dim 1 : vector<8x128xf32>, i32 -> vector<8x128xf32>
    %163 = arith.mulf %162, %155 : vector<8x128xf32>
    %164 = arith.addf %149, %163 : vector<8x128xf32>
    %165 = math.tanh %164 : vector<8x128xf32>
    %c32_i32_75 = arith.constant 32 : i32
    %166 = tpu.dynamic_rotate %161 by %c32_i32_75 dim 1 : vector<8x128xf32>, i32 -> vector<8x128xf32>
    %167 = arith.subf %122, %165 : vector<8x128xf32>
    %168 = arith.mulf %166, %167 : vector<8x128xf32>
    %169 = arith.addf %165, %168 : vector<8x128xf32>
    %170 = arith.truncf %169 : vector<8x128xf32> to vector<8x128xbf16>
    %c0_76 = arith.constant 0 : index
    %c0_77 = arith.constant 0 : index
    %171 = vector.load %arg5[%c0_76, %c0_77] : memref<128x128xbf16, #tpu.memory_space<vmem>>, vector<128x128xbf16>
    %cst_78 = arith.constant dense<0.000000e+00> : vector<8x128xf32>
    %172 = tpu.matmul %170, %171, %cst_78 {dimension_numbers = #tpu.dot_dimension_numbers<[1], [0], [0], [1], [0, 0, 1, 1], [], []>} : vector<8x128xbf16>, vector<128x128xbf16>, vector<8x128xf32> -> vector<8x128xf32>
    %c0_79 = arith.constant 0 : index
    %c0_80 = arith.constant 0 : index
    %173 = vector.load %arg7[%c0_79, %c0_80] : memref<1x128xf32, #tpu.memory_space<vmem>>, vector<1x128xf32>
    %174 = vector.broadcast %173 : vector<1x128xf32> to vector<8x128xf32>
    %175 = arith.addf %172, %174 : vector<8x128xf32>
    %176 = arith.truncf %148 : vector<8x128xf32> to vector<8x128xbf16>
    %c0_81 = arith.constant 0 : index
    %c0_82 = arith.constant 0 : index
    %177 = vector.load %arg6[%c0_81, %c0_82] : memref<128x128xbf16, #tpu.memory_space<vmem>>, vector<128x128xbf16>
    %cst_83 = arith.constant dense<0.000000e+00> : vector<8x128xf32>
    %178 = tpu.matmul %176, %177, %cst_83 {dimension_numbers = #tpu.dot_dimension_numbers<[1], [0], [0], [1], [0, 0, 1, 1], [], []>} : vector<8x128xbf16>, vector<128x128xbf16>, vector<8x128xf32> -> vector<8x128xf32>
    %c0_84 = arith.constant 0 : index
    %c0_85 = arith.constant 0 : index
    %179 = vector.load %arg8[%c0_84, %c0_85] : memref<1x128xf32, #tpu.memory_space<vmem>>, vector<1x128xf32>
    %180 = vector.broadcast %179 : vector<1x128xf32> to vector<8x128xf32>
    %181 = arith.addf %178, %180 : vector<8x128xf32>
    %182 = arith.addf %175, %181 : vector<8x128xf32>
    %183 = arith.negf %182 : vector<8x128xf32>
    %184 = math.exp %183 : vector<8x128xf32>
    %cst_86 = arith.constant 1.000000e+00 : f32
    %185 = vector.broadcast %cst_86 : f32 to vector<8x128xf32>
    %186 = arith.addf %185, %184 : vector<8x128xf32>
    %187 = arith.divf %185, %186 : vector<8x128xf32>
    %c64_i32_87 = arith.constant 64 : i32
    %188 = tpu.dynamic_rotate %187 by %c64_i32_87 dim 1 : vector<8x128xf32>, i32 -> vector<8x128xf32>
    %189 = arith.mulf %188, %181 : vector<8x128xf32>
    %190 = arith.addf %175, %189 : vector<8x128xf32>
    %191 = math.tanh %190 : vector<8x128xf32>
    %c32_i32_88 = arith.constant 32 : i32
    %192 = tpu.dynamic_rotate %187 by %c32_i32_88 dim 1 : vector<8x128xf32>, i32 -> vector<8x128xf32>
    %193 = arith.subf %148, %191 : vector<8x128xf32>
    %194 = arith.mulf %192, %193 : vector<8x128xf32>
    %195 = arith.addf %191, %194 : vector<8x128xf32>
    %196 = vector.extract_strided_slice %5 {offsets = [32, 0], sizes = [8, 128], strides = [1, 1]} : vector<64x128xf32> to vector<8x128xf32>
    %197 = arith.truncf %169 : vector<8x128xf32> to vector<8x128xbf16>
    %c0_89 = arith.constant 0 : index
    %c0_90 = arith.constant 0 : index
    %198 = vector.load %arg2[%c0_89, %c0_90] : memref<128x128xbf16, #tpu.memory_space<vmem>>, vector<128x128xbf16>
    %cst_91 = arith.constant dense<0.000000e+00> : vector<8x128xf32>
    %199 = tpu.matmul %197, %198, %cst_91 {dimension_numbers = #tpu.dot_dimension_numbers<[1], [0], [0], [1], [0, 0, 1, 1], [], []>} : vector<8x128xbf16>, vector<128x128xbf16>, vector<8x128xf32> -> vector<8x128xf32>
    %c0_92 = arith.constant 0 : index
    %c0_93 = arith.constant 0 : index
    %200 = vector.load %arg4[%c0_92, %c0_93] : memref<1x128xf32, #tpu.memory_space<vmem>>, vector<1x128xf32>
    %201 = vector.broadcast %200 : vector<1x128xf32> to vector<8x128xf32>
    %202 = arith.addf %199, %201 : vector<8x128xf32>
    %203 = arith.addf %196, %202 : vector<8x128xf32>
    %204 = arith.negf %203 : vector<8x128xf32>
    %205 = math.exp %204 : vector<8x128xf32>
    %cst_94 = arith.constant 1.000000e+00 : f32
    %206 = vector.broadcast %cst_94 : f32 to vector<8x128xf32>
    %207 = arith.addf %206, %205 : vector<8x128xf32>
    %208 = arith.divf %206, %207 : vector<8x128xf32>
    %c64_i32_95 = arith.constant 64 : i32
    %209 = tpu.dynamic_rotate %208 by %c64_i32_95 dim 1 : vector<8x128xf32>, i32 -> vector<8x128xf32>
    %210 = arith.mulf %209, %202 : vector<8x128xf32>
    %211 = arith.addf %196, %210 : vector<8x128xf32>
    %212 = math.tanh %211 : vector<8x128xf32>
    %c32_i32_96 = arith.constant 32 : i32
    %213 = tpu.dynamic_rotate %208 by %c32_i32_96 dim 1 : vector<8x128xf32>, i32 -> vector<8x128xf32>
    %214 = arith.subf %169, %212 : vector<8x128xf32>
    %215 = arith.mulf %213, %214 : vector<8x128xf32>
    %216 = arith.addf %212, %215 : vector<8x128xf32>
    %217 = arith.truncf %216 : vector<8x128xf32> to vector<8x128xbf16>
    %c0_97 = arith.constant 0 : index
    %c0_98 = arith.constant 0 : index
    %218 = vector.load %arg5[%c0_97, %c0_98] : memref<128x128xbf16, #tpu.memory_space<vmem>>, vector<128x128xbf16>
    %cst_99 = arith.constant dense<0.000000e+00> : vector<8x128xf32>
    %219 = tpu.matmul %217, %218, %cst_99 {dimension_numbers = #tpu.dot_dimension_numbers<[1], [0], [0], [1], [0, 0, 1, 1], [], []>} : vector<8x128xbf16>, vector<128x128xbf16>, vector<8x128xf32> -> vector<8x128xf32>
    %c0_100 = arith.constant 0 : index
    %c0_101 = arith.constant 0 : index
    %220 = vector.load %arg7[%c0_100, %c0_101] : memref<1x128xf32, #tpu.memory_space<vmem>>, vector<1x128xf32>
    %221 = vector.broadcast %220 : vector<1x128xf32> to vector<8x128xf32>
    %222 = arith.addf %219, %221 : vector<8x128xf32>
    %223 = arith.truncf %195 : vector<8x128xf32> to vector<8x128xbf16>
    %c0_102 = arith.constant 0 : index
    %c0_103 = arith.constant 0 : index
    %224 = vector.load %arg6[%c0_102, %c0_103] : memref<128x128xbf16, #tpu.memory_space<vmem>>, vector<128x128xbf16>
    %cst_104 = arith.constant dense<0.000000e+00> : vector<8x128xf32>
    %225 = tpu.matmul %223, %224, %cst_104 {dimension_numbers = #tpu.dot_dimension_numbers<[1], [0], [0], [1], [0, 0, 1, 1], [], []>} : vector<8x128xbf16>, vector<128x128xbf16>, vector<8x128xf32> -> vector<8x128xf32>
    %c0_105 = arith.constant 0 : index
    %c0_106 = arith.constant 0 : index
    %226 = vector.load %arg8[%c0_105, %c0_106] : memref<1x128xf32, #tpu.memory_space<vmem>>, vector<1x128xf32>
    %227 = vector.broadcast %226 : vector<1x128xf32> to vector<8x128xf32>
    %228 = arith.addf %225, %227 : vector<8x128xf32>
    %229 = arith.addf %222, %228 : vector<8x128xf32>
    %230 = arith.negf %229 : vector<8x128xf32>
    %231 = math.exp %230 : vector<8x128xf32>
    %cst_107 = arith.constant 1.000000e+00 : f32
    %232 = vector.broadcast %cst_107 : f32 to vector<8x128xf32>
    %233 = arith.addf %232, %231 : vector<8x128xf32>
    %234 = arith.divf %232, %233 : vector<8x128xf32>
    %c64_i32_108 = arith.constant 64 : i32
    %235 = tpu.dynamic_rotate %234 by %c64_i32_108 dim 1 : vector<8x128xf32>, i32 -> vector<8x128xf32>
    %236 = arith.mulf %235, %228 : vector<8x128xf32>
    %237 = arith.addf %222, %236 : vector<8x128xf32>
    %238 = math.tanh %237 : vector<8x128xf32>
    %c32_i32_109 = arith.constant 32 : i32
    %239 = tpu.dynamic_rotate %234 by %c32_i32_109 dim 1 : vector<8x128xf32>, i32 -> vector<8x128xf32>
    %240 = arith.subf %195, %238 : vector<8x128xf32>
    %241 = arith.mulf %239, %240 : vector<8x128xf32>
    %242 = arith.addf %238, %241 : vector<8x128xf32>
    %243 = vector.extract_strided_slice %5 {offsets = [40, 0], sizes = [8, 128], strides = [1, 1]} : vector<64x128xf32> to vector<8x128xf32>
    %244 = arith.truncf %216 : vector<8x128xf32> to vector<8x128xbf16>
    %c0_110 = arith.constant 0 : index
    %c0_111 = arith.constant 0 : index
    %245 = vector.load %arg2[%c0_110, %c0_111] : memref<128x128xbf16, #tpu.memory_space<vmem>>, vector<128x128xbf16>
    %cst_112 = arith.constant dense<0.000000e+00> : vector<8x128xf32>
    %246 = tpu.matmul %244, %245, %cst_112 {dimension_numbers = #tpu.dot_dimension_numbers<[1], [0], [0], [1], [0, 0, 1, 1], [], []>} : vector<8x128xbf16>, vector<128x128xbf16>, vector<8x128xf32> -> vector<8x128xf32>
    %c0_113 = arith.constant 0 : index
    %c0_114 = arith.constant 0 : index
    %247 = vector.load %arg4[%c0_113, %c0_114] : memref<1x128xf32, #tpu.memory_space<vmem>>, vector<1x128xf32>
    %248 = vector.broadcast %247 : vector<1x128xf32> to vector<8x128xf32>
    %249 = arith.addf %246, %248 : vector<8x128xf32>
    %250 = arith.addf %243, %249 : vector<8x128xf32>
    %251 = arith.negf %250 : vector<8x128xf32>
    %252 = math.exp %251 : vector<8x128xf32>
    %cst_115 = arith.constant 1.000000e+00 : f32
    %253 = vector.broadcast %cst_115 : f32 to vector<8x128xf32>
    %254 = arith.addf %253, %252 : vector<8x128xf32>
    %255 = arith.divf %253, %254 : vector<8x128xf32>
    %c64_i32_116 = arith.constant 64 : i32
    %256 = tpu.dynamic_rotate %255 by %c64_i32_116 dim 1 : vector<8x128xf32>, i32 -> vector<8x128xf32>
    %257 = arith.mulf %256, %249 : vector<8x128xf32>
    %258 = arith.addf %243, %257 : vector<8x128xf32>
    %259 = math.tanh %258 : vector<8x128xf32>
    %c32_i32_117 = arith.constant 32 : i32
    %260 = tpu.dynamic_rotate %255 by %c32_i32_117 dim 1 : vector<8x128xf32>, i32 -> vector<8x128xf32>
    %261 = arith.subf %216, %259 : vector<8x128xf32>
    %262 = arith.mulf %260, %261 : vector<8x128xf32>
    %263 = arith.addf %259, %262 : vector<8x128xf32>
    %264 = arith.truncf %263 : vector<8x128xf32> to vector<8x128xbf16>
    %c0_118 = arith.constant 0 : index
    %c0_119 = arith.constant 0 : index
    %265 = vector.load %arg5[%c0_118, %c0_119] : memref<128x128xbf16, #tpu.memory_space<vmem>>, vector<128x128xbf16>
    %cst_120 = arith.constant dense<0.000000e+00> : vector<8x128xf32>
    %266 = tpu.matmul %264, %265, %cst_120 {dimension_numbers = #tpu.dot_dimension_numbers<[1], [0], [0], [1], [0, 0, 1, 1], [], []>} : vector<8x128xbf16>, vector<128x128xbf16>, vector<8x128xf32> -> vector<8x128xf32>
    %c0_121 = arith.constant 0 : index
    %c0_122 = arith.constant 0 : index
    %267 = vector.load %arg7[%c0_121, %c0_122] : memref<1x128xf32, #tpu.memory_space<vmem>>, vector<1x128xf32>
    %268 = vector.broadcast %267 : vector<1x128xf32> to vector<8x128xf32>
    %269 = arith.addf %266, %268 : vector<8x128xf32>
    %270 = arith.truncf %242 : vector<8x128xf32> to vector<8x128xbf16>
    %c0_123 = arith.constant 0 : index
    %c0_124 = arith.constant 0 : index
    %271 = vector.load %arg6[%c0_123, %c0_124] : memref<128x128xbf16, #tpu.memory_space<vmem>>, vector<128x128xbf16>
    %cst_125 = arith.constant dense<0.000000e+00> : vector<8x128xf32>
    %272 = tpu.matmul %270, %271, %cst_125 {dimension_numbers = #tpu.dot_dimension_numbers<[1], [0], [0], [1], [0, 0, 1, 1], [], []>} : vector<8x128xbf16>, vector<128x128xbf16>, vector<8x128xf32> -> vector<8x128xf32>
    %c0_126 = arith.constant 0 : index
    %c0_127 = arith.constant 0 : index
    %273 = vector.load %arg8[%c0_126, %c0_127] : memref<1x128xf32, #tpu.memory_space<vmem>>, vector<1x128xf32>
    %274 = vector.broadcast %273 : vector<1x128xf32> to vector<8x128xf32>
    %275 = arith.addf %272, %274 : vector<8x128xf32>
    %276 = arith.addf %269, %275 : vector<8x128xf32>
    %277 = arith.negf %276 : vector<8x128xf32>
    %278 = math.exp %277 : vector<8x128xf32>
    %cst_128 = arith.constant 1.000000e+00 : f32
    %279 = vector.broadcast %cst_128 : f32 to vector<8x128xf32>
    %280 = arith.addf %279, %278 : vector<8x128xf32>
    %281 = arith.divf %279, %280 : vector<8x128xf32>
    %c64_i32_129 = arith.constant 64 : i32
    %282 = tpu.dynamic_rotate %281 by %c64_i32_129 dim 1 : vector<8x128xf32>, i32 -> vector<8x128xf32>
    %283 = arith.mulf %282, %275 : vector<8x128xf32>
    %284 = arith.addf %269, %283 : vector<8x128xf32>
    %285 = math.tanh %284 : vector<8x128xf32>
    %c32_i32_130 = arith.constant 32 : i32
    %286 = tpu.dynamic_rotate %281 by %c32_i32_130 dim 1 : vector<8x128xf32>, i32 -> vector<8x128xf32>
    %287 = arith.subf %242, %285 : vector<8x128xf32>
    %288 = arith.mulf %286, %287 : vector<8x128xf32>
    %289 = arith.addf %285, %288 : vector<8x128xf32>
    %290 = vector.extract_strided_slice %5 {offsets = [48, 0], sizes = [8, 128], strides = [1, 1]} : vector<64x128xf32> to vector<8x128xf32>
    %291 = arith.truncf %263 : vector<8x128xf32> to vector<8x128xbf16>
    %c0_131 = arith.constant 0 : index
    %c0_132 = arith.constant 0 : index
    %292 = vector.load %arg2[%c0_131, %c0_132] : memref<128x128xbf16, #tpu.memory_space<vmem>>, vector<128x128xbf16>
    %cst_133 = arith.constant dense<0.000000e+00> : vector<8x128xf32>
    %293 = tpu.matmul %291, %292, %cst_133 {dimension_numbers = #tpu.dot_dimension_numbers<[1], [0], [0], [1], [0, 0, 1, 1], [], []>} : vector<8x128xbf16>, vector<128x128xbf16>, vector<8x128xf32> -> vector<8x128xf32>
    %c0_134 = arith.constant 0 : index
    %c0_135 = arith.constant 0 : index
    %294 = vector.load %arg4[%c0_134, %c0_135] : memref<1x128xf32, #tpu.memory_space<vmem>>, vector<1x128xf32>
    %295 = vector.broadcast %294 : vector<1x128xf32> to vector<8x128xf32>
    %296 = arith.addf %293, %295 : vector<8x128xf32>
    %297 = arith.addf %290, %296 : vector<8x128xf32>
    %298 = arith.negf %297 : vector<8x128xf32>
    %299 = math.exp %298 : vector<8x128xf32>
    %cst_136 = arith.constant 1.000000e+00 : f32
    %300 = vector.broadcast %cst_136 : f32 to vector<8x128xf32>
    %301 = arith.addf %300, %299 : vector<8x128xf32>
    %302 = arith.divf %300, %301 : vector<8x128xf32>
    %c64_i32_137 = arith.constant 64 : i32
    %303 = tpu.dynamic_rotate %302 by %c64_i32_137 dim 1 : vector<8x128xf32>, i32 -> vector<8x128xf32>
    %304 = arith.mulf %303, %296 : vector<8x128xf32>
    %305 = arith.addf %290, %304 : vector<8x128xf32>
    %306 = math.tanh %305 : vector<8x128xf32>
    %c32_i32_138 = arith.constant 32 : i32
    %307 = tpu.dynamic_rotate %302 by %c32_i32_138 dim 1 : vector<8x128xf32>, i32 -> vector<8x128xf32>
    %308 = arith.subf %263, %306 : vector<8x128xf32>
    %309 = arith.mulf %307, %308 : vector<8x128xf32>
    %310 = arith.addf %306, %309 : vector<8x128xf32>
    %311 = arith.truncf %310 : vector<8x128xf32> to vector<8x128xbf16>
    %c0_139 = arith.constant 0 : index
    %c0_140 = arith.constant 0 : index
    %312 = vector.load %arg5[%c0_139, %c0_140] : memref<128x128xbf16, #tpu.memory_space<vmem>>, vector<128x128xbf16>
    %cst_141 = arith.constant dense<0.000000e+00> : vector<8x128xf32>
    %313 = tpu.matmul %311, %312, %cst_141 {dimension_numbers = #tpu.dot_dimension_numbers<[1], [0], [0], [1], [0, 0, 1, 1], [], []>} : vector<8x128xbf16>, vector<128x128xbf16>, vector<8x128xf32> -> vector<8x128xf32>
    %c0_142 = arith.constant 0 : index
    %c0_143 = arith.constant 0 : index
    %314 = vector.load %arg7[%c0_142, %c0_143] : memref<1x128xf32, #tpu.memory_space<vmem>>, vector<1x128xf32>
    %315 = vector.broadcast %314 : vector<1x128xf32> to vector<8x128xf32>
    %316 = arith.addf %313, %315 : vector<8x128xf32>
    %317 = arith.truncf %289 : vector<8x128xf32> to vector<8x128xbf16>
    %c0_144 = arith.constant 0 : index
    %c0_145 = arith.constant 0 : index
    %318 = vector.load %arg6[%c0_144, %c0_145] : memref<128x128xbf16, #tpu.memory_space<vmem>>, vector<128x128xbf16>
    %cst_146 = arith.constant dense<0.000000e+00> : vector<8x128xf32>
    %319 = tpu.matmul %317, %318, %cst_146 {dimension_numbers = #tpu.dot_dimension_numbers<[1], [0], [0], [1], [0, 0, 1, 1], [], []>} : vector<8x128xbf16>, vector<128x128xbf16>, vector<8x128xf32> -> vector<8x128xf32>
    %c0_147 = arith.constant 0 : index
    %c0_148 = arith.constant 0 : index
    %320 = vector.load %arg8[%c0_147, %c0_148] : memref<1x128xf32, #tpu.memory_space<vmem>>, vector<1x128xf32>
    %321 = vector.broadcast %320 : vector<1x128xf32> to vector<8x128xf32>
    %322 = arith.addf %319, %321 : vector<8x128xf32>
    %323 = arith.addf %316, %322 : vector<8x128xf32>
    %324 = arith.negf %323 : vector<8x128xf32>
    %325 = math.exp %324 : vector<8x128xf32>
    %cst_149 = arith.constant 1.000000e+00 : f32
    %326 = vector.broadcast %cst_149 : f32 to vector<8x128xf32>
    %327 = arith.addf %326, %325 : vector<8x128xf32>
    %328 = arith.divf %326, %327 : vector<8x128xf32>
    %c64_i32_150 = arith.constant 64 : i32
    %329 = tpu.dynamic_rotate %328 by %c64_i32_150 dim 1 : vector<8x128xf32>, i32 -> vector<8x128xf32>
    %330 = arith.mulf %329, %322 : vector<8x128xf32>
    %331 = arith.addf %316, %330 : vector<8x128xf32>
    %332 = math.tanh %331 : vector<8x128xf32>
    %c32_i32_151 = arith.constant 32 : i32
    %333 = tpu.dynamic_rotate %328 by %c32_i32_151 dim 1 : vector<8x128xf32>, i32 -> vector<8x128xf32>
    %334 = arith.subf %289, %332 : vector<8x128xf32>
    %335 = arith.mulf %333, %334 : vector<8x128xf32>
    %336 = arith.addf %332, %335 : vector<8x128xf32>
    %337 = vector.extract_strided_slice %5 {offsets = [56, 0], sizes = [8, 128], strides = [1, 1]} : vector<64x128xf32> to vector<8x128xf32>
    %338 = arith.truncf %310 : vector<8x128xf32> to vector<8x128xbf16>
    %c0_152 = arith.constant 0 : index
    %c0_153 = arith.constant 0 : index
    %339 = vector.load %arg2[%c0_152, %c0_153] : memref<128x128xbf16, #tpu.memory_space<vmem>>, vector<128x128xbf16>
    %cst_154 = arith.constant dense<0.000000e+00> : vector<8x128xf32>
    %340 = tpu.matmul %338, %339, %cst_154 {dimension_numbers = #tpu.dot_dimension_numbers<[1], [0], [0], [1], [0, 0, 1, 1], [], []>} : vector<8x128xbf16>, vector<128x128xbf16>, vector<8x128xf32> -> vector<8x128xf32>
    %c0_155 = arith.constant 0 : index
    %c0_156 = arith.constant 0 : index
    %341 = vector.load %arg4[%c0_155, %c0_156] : memref<1x128xf32, #tpu.memory_space<vmem>>, vector<1x128xf32>
    %342 = vector.broadcast %341 : vector<1x128xf32> to vector<8x128xf32>
    %343 = arith.addf %340, %342 : vector<8x128xf32>
    %344 = arith.addf %337, %343 : vector<8x128xf32>
    %345 = arith.negf %344 : vector<8x128xf32>
    %346 = math.exp %345 : vector<8x128xf32>
    %cst_157 = arith.constant 1.000000e+00 : f32
    %347 = vector.broadcast %cst_157 : f32 to vector<8x128xf32>
    %348 = arith.addf %347, %346 : vector<8x128xf32>
    %349 = arith.divf %347, %348 : vector<8x128xf32>
    %c64_i32_158 = arith.constant 64 : i32
    %350 = tpu.dynamic_rotate %349 by %c64_i32_158 dim 1 : vector<8x128xf32>, i32 -> vector<8x128xf32>
    %351 = arith.mulf %350, %343 : vector<8x128xf32>
    %352 = arith.addf %337, %351 : vector<8x128xf32>
    %353 = math.tanh %352 : vector<8x128xf32>
    %c32_i32_159 = arith.constant 32 : i32
    %354 = tpu.dynamic_rotate %349 by %c32_i32_159 dim 1 : vector<8x128xf32>, i32 -> vector<8x128xf32>
    %355 = arith.subf %310, %353 : vector<8x128xf32>
    %356 = arith.mulf %354, %355 : vector<8x128xf32>
    %357 = arith.addf %353, %356 : vector<8x128xf32>
    %358 = arith.truncf %357 : vector<8x128xf32> to vector<8x128xbf16>
    %c0_160 = arith.constant 0 : index
    %c0_161 = arith.constant 0 : index
    %359 = vector.load %arg5[%c0_160, %c0_161] : memref<128x128xbf16, #tpu.memory_space<vmem>>, vector<128x128xbf16>
    %cst_162 = arith.constant dense<0.000000e+00> : vector<8x128xf32>
    %360 = tpu.matmul %358, %359, %cst_162 {dimension_numbers = #tpu.dot_dimension_numbers<[1], [0], [0], [1], [0, 0, 1, 1], [], []>} : vector<8x128xbf16>, vector<128x128xbf16>, vector<8x128xf32> -> vector<8x128xf32>
    %c0_163 = arith.constant 0 : index
    %c0_164 = arith.constant 0 : index
    %361 = vector.load %arg7[%c0_163, %c0_164] : memref<1x128xf32, #tpu.memory_space<vmem>>, vector<1x128xf32>
    %362 = vector.broadcast %361 : vector<1x128xf32> to vector<8x128xf32>
    %363 = arith.addf %360, %362 : vector<8x128xf32>
    %364 = arith.truncf %336 : vector<8x128xf32> to vector<8x128xbf16>
    %c0_165 = arith.constant 0 : index
    %c0_166 = arith.constant 0 : index
    %365 = vector.load %arg6[%c0_165, %c0_166] : memref<128x128xbf16, #tpu.memory_space<vmem>>, vector<128x128xbf16>
    %cst_167 = arith.constant dense<0.000000e+00> : vector<8x128xf32>
    %366 = tpu.matmul %364, %365, %cst_167 {dimension_numbers = #tpu.dot_dimension_numbers<[1], [0], [0], [1], [0, 0, 1, 1], [], []>} : vector<8x128xbf16>, vector<128x128xbf16>, vector<8x128xf32> -> vector<8x128xf32>
    %c0_168 = arith.constant 0 : index
    %c0_169 = arith.constant 0 : index
    %367 = vector.load %arg8[%c0_168, %c0_169] : memref<1x128xf32, #tpu.memory_space<vmem>>, vector<1x128xf32>
    %368 = vector.broadcast %367 : vector<1x128xf32> to vector<8x128xf32>
    %369 = arith.addf %366, %368 : vector<8x128xf32>
    %370 = arith.addf %363, %369 : vector<8x128xf32>
    %371 = arith.negf %370 : vector<8x128xf32>
    %372 = math.exp %371 : vector<8x128xf32>
    %cst_170 = arith.constant 1.000000e+00 : f32
    %373 = vector.broadcast %cst_170 : f32 to vector<8x128xf32>
    %374 = arith.addf %373, %372 : vector<8x128xf32>
    %375 = arith.divf %373, %374 : vector<8x128xf32>
    %c64_i32_171 = arith.constant 64 : i32
    %376 = tpu.dynamic_rotate %375 by %c64_i32_171 dim 1 : vector<8x128xf32>, i32 -> vector<8x128xf32>
    %377 = arith.mulf %376, %369 : vector<8x128xf32>
    %378 = arith.addf %363, %377 : vector<8x128xf32>
    %379 = math.tanh %378 : vector<8x128xf32>
    %c32_i32_172 = arith.constant 32 : i32
    %380 = tpu.dynamic_rotate %375 by %c32_i32_172 dim 1 : vector<8x128xf32>, i32 -> vector<8x128xf32>
    %381 = arith.subf %336, %379 : vector<8x128xf32>
    %382 = arith.mulf %380, %381 : vector<8x128xf32>
    %383 = arith.addf %379, %382 : vector<8x128xf32>
    %384 = tpu.iota {dimensions = array<i32: 1>} : vector<8x128xi32>
    %c64_i32_173 = arith.constant 64 : i32
    %385 = vector.broadcast %c64_i32_173 : i32 to vector<8x128xi32>
    %386 = arith.cmpi sge, %384, %385 : vector<8x128xi32>
    %c96_i32 = arith.constant 96 : i32
    %387 = vector.broadcast %c96_i32 : i32 to vector<8x128xi32>
    %388 = arith.cmpi slt, %384, %387 : vector<8x128xi32>
    %389 = arith.andi %386, %388 : vector<8x128xi1>
    %cst_174 = arith.constant 0.000000e+00 : f32
    %390 = vector.broadcast %cst_174 : f32 to vector<8x128xf32>
    %391 = arith.select %389, %383, %390 : vector<8x128xi1>, vector<8x128xf32>
    %392 = arith.mulf %54, %391 : vector<8x128xf32>
    %cst_175 = arith.constant dense<0.000000e+00> : vector<8xf32>
    %393 = vector.multi_reduction <add>, %392, %cst_175 [1] : vector<8x128xf32> to vector<8xf32>
    %394 = vector.shape_cast %393 : vector<8xf32> to vector<8x1xf32>
    %395 = arith.mulf %101, %391 : vector<8x128xf32>
    %cst_176 = arith.constant dense<0.000000e+00> : vector<8xf32>
    %396 = vector.multi_reduction <add>, %395, %cst_176 [1] : vector<8x128xf32> to vector<8xf32>
    %397 = vector.shape_cast %396 : vector<8xf32> to vector<8x1xf32>
    %398 = arith.mulf %148, %391 : vector<8x128xf32>
    %cst_177 = arith.constant dense<0.000000e+00> : vector<8xf32>
    %399 = vector.multi_reduction <add>, %398, %cst_177 [1] : vector<8x128xf32> to vector<8xf32>
    %400 = vector.shape_cast %399 : vector<8xf32> to vector<8x1xf32>
    %401 = arith.mulf %195, %391 : vector<8x128xf32>
    %cst_178 = arith.constant dense<0.000000e+00> : vector<8xf32>
    %402 = vector.multi_reduction <add>, %401, %cst_178 [1] : vector<8x128xf32> to vector<8xf32>
    %403 = vector.shape_cast %402 : vector<8xf32> to vector<8x1xf32>
    %404 = arith.mulf %242, %391 : vector<8x128xf32>
    %cst_179 = arith.constant dense<0.000000e+00> : vector<8xf32>
    %405 = vector.multi_reduction <add>, %404, %cst_179 [1] : vector<8x128xf32> to vector<8xf32>
    %406 = vector.shape_cast %405 : vector<8xf32> to vector<8x1xf32>
    %407 = arith.mulf %289, %391 : vector<8x128xf32>
    %cst_180 = arith.constant dense<0.000000e+00> : vector<8xf32>
    %408 = vector.multi_reduction <add>, %407, %cst_180 [1] : vector<8x128xf32> to vector<8xf32>
    %409 = vector.shape_cast %408 : vector<8xf32> to vector<8x1xf32>
    %410 = arith.mulf %336, %391 : vector<8x128xf32>
    %cst_181 = arith.constant dense<0.000000e+00> : vector<8xf32>
    %411 = vector.multi_reduction <add>, %410, %cst_181 [1] : vector<8x128xf32> to vector<8xf32>
    %412 = vector.shape_cast %411 : vector<8xf32> to vector<8x1xf32>
    %413 = arith.mulf %383, %391 : vector<8x128xf32>
    %cst_182 = arith.constant dense<0.000000e+00> : vector<8xf32>
    %414 = vector.multi_reduction <add>, %413, %cst_182 [1] : vector<8x128xf32> to vector<8xf32>
    %415 = vector.shape_cast %414 : vector<8xf32> to vector<8x1xf32>
    %416 = arith.maximumf %394, %397 : vector<8x1xf32>
    %417 = arith.maximumf %400, %403 : vector<8x1xf32>
    %418 = arith.maximumf %406, %409 : vector<8x1xf32>
    %419 = arith.maximumf %412, %415 : vector<8x1xf32>
    %420 = arith.maximumf %416, %417 : vector<8x1xf32>
    %421 = arith.maximumf %418, %419 : vector<8x1xf32>
    %422 = arith.maximumf %420, %421 : vector<8x1xf32>
    %423 = arith.subf %394, %422 : vector<8x1xf32>
    %424 = math.exp %423 : vector<8x1xf32>
    %425 = arith.subf %397, %422 : vector<8x1xf32>
    %426 = math.exp %425 : vector<8x1xf32>
    %427 = arith.subf %400, %422 : vector<8x1xf32>
    %428 = math.exp %427 : vector<8x1xf32>
    %429 = arith.subf %403, %422 : vector<8x1xf32>
    %430 = math.exp %429 : vector<8x1xf32>
    %431 = arith.subf %406, %422 : vector<8x1xf32>
    %432 = math.exp %431 : vector<8x1xf32>
    %433 = arith.subf %409, %422 : vector<8x1xf32>
    %434 = math.exp %433 : vector<8x1xf32>
    %435 = arith.subf %412, %422 : vector<8x1xf32>
    %436 = math.exp %435 : vector<8x1xf32>
    %437 = arith.subf %415, %422 : vector<8x1xf32>
    %438 = math.exp %437 : vector<8x1xf32>
    %439 = arith.addf %424, %426 : vector<8x1xf32>
    %440 = arith.addf %428, %430 : vector<8x1xf32>
    %441 = arith.addf %432, %434 : vector<8x1xf32>
    %442 = arith.addf %436, %438 : vector<8x1xf32>
    %443 = arith.addf %439, %440 : vector<8x1xf32>
    %444 = arith.addf %441, %442 : vector<8x1xf32>
    %445 = arith.addf %443, %444 : vector<8x1xf32>
    %446 = tpu.reciprocal %445 {approx = true} : vector<8x1xf32> -> vector<8x1xf32>
    %447 = arith.mulf %424, %446 : vector<8x1xf32>
    %448 = vector.broadcast %447 : vector<8x1xf32> to vector<8x128xf32>
    %449 = arith.mulf %448, %54 : vector<8x128xf32>
    %450 = arith.mulf %426, %446 : vector<8x1xf32>
    %451 = vector.broadcast %450 : vector<8x1xf32> to vector<8x128xf32>
    %452 = arith.mulf %451, %101 : vector<8x128xf32>
    %453 = arith.mulf %428, %446 : vector<8x1xf32>
    %454 = vector.broadcast %453 : vector<8x1xf32> to vector<8x128xf32>
    %455 = arith.mulf %454, %148 : vector<8x128xf32>
    %456 = arith.mulf %430, %446 : vector<8x1xf32>
    %457 = vector.broadcast %456 : vector<8x1xf32> to vector<8x128xf32>
    %458 = arith.mulf %457, %195 : vector<8x128xf32>
    %459 = arith.mulf %432, %446 : vector<8x1xf32>
    %460 = vector.broadcast %459 : vector<8x1xf32> to vector<8x128xf32>
    %461 = arith.mulf %460, %242 : vector<8x128xf32>
    %462 = arith.mulf %434, %446 : vector<8x1xf32>
    %463 = vector.broadcast %462 : vector<8x1xf32> to vector<8x128xf32>
    %464 = arith.mulf %463, %289 : vector<8x128xf32>
    %465 = arith.mulf %436, %446 : vector<8x1xf32>
    %466 = vector.broadcast %465 : vector<8x1xf32> to vector<8x128xf32>
    %467 = arith.mulf %466, %336 : vector<8x128xf32>
    %468 = arith.mulf %438, %446 : vector<8x1xf32>
    %469 = vector.broadcast %468 : vector<8x1xf32> to vector<8x128xf32>
    %470 = arith.mulf %469, %383 : vector<8x128xf32>
    %471 = arith.addf %449, %452 : vector<8x128xf32>
    %472 = arith.addf %455, %458 : vector<8x128xf32>
    %473 = arith.addf %461, %464 : vector<8x128xf32>
    %474 = arith.addf %467, %470 : vector<8x128xf32>
    %475 = arith.addf %471, %472 : vector<8x128xf32>
    %476 = arith.addf %473, %474 : vector<8x128xf32>
    %477 = arith.addf %475, %476 : vector<8x128xf32>
    %478 = tpu.concatenate %477, %383 in 1 : vector<8x128xf32>, vector<8x128xf32> -> vector<8x256xf32>
    %479 = arith.truncf %478 : vector<8x256xf32> to vector<8x256xbf16>
    %c0_183 = arith.constant 0 : index
    %c0_184 = arith.constant 0 : index
    %480 = vector.load %arg9[%c0_183, %c0_184] : memref<256x128xbf16, #tpu.memory_space<vmem>>, vector<256x128xbf16>
    %cst_185 = arith.constant dense<0.000000e+00> : vector<8x128xf32>
    %481 = tpu.matmul %479, %480, %cst_185 {dimension_numbers = #tpu.dot_dimension_numbers<[1], [0], [0], [1], [0, 0, 1, 1], [], []>} : vector<8x256xbf16>, vector<256x128xbf16>, vector<8x128xf32> -> vector<8x128xf32>
    %cst_186 = arith.constant 0.000000e+00 : f32
    %482 = vector.broadcast %cst_186 : f32 to vector<8x128xf32>
    %483 = arith.maximumf %481, %482 : vector<8x128xf32>
    %484 = arith.truncf %483 : vector<8x128xf32> to vector<8x128xbf16>
    %c0_187 = arith.constant 0 : index
    %c0_188 = arith.constant 0 : index
    %485 = vector.load %arg10[%c0_187, %c0_188] : memref<128x128xbf16, #tpu.memory_space<vmem>>, vector<128x128xbf16>
    %cst_189 = arith.constant dense<0.000000e+00> : vector<8x128xf32>
    %486 = tpu.matmul %484, %485, %cst_189 {dimension_numbers = #tpu.dot_dimension_numbers<[1], [0], [0], [1], [0, 0, 1, 1], [], []>} : vector<8x128xbf16>, vector<128x128xbf16>, vector<8x128xf32> -> vector<8x128xf32>
    %c0_190 = arith.constant 0 : index
    %c0_191 = arith.constant 0 : index
    %487 = vector.load %arg11[%c0_190, %c0_191] : memref<1x128xf32, #tpu.memory_space<vmem>>, vector<1x128xf32>
    %488 = vector.broadcast %487 : vector<1x128xf32> to vector<8x128xf32>
    %489 = arith.addf %486, %488 : vector<8x128xf32>
    %c0_192 = arith.constant 0 : index
    %c0_193 = arith.constant 0 : index
    %490 = vector.load %arg12[%c0_192, %c0_193] : memref<8x128xf32, #tpu.memory_space<vmem>>, vector<8x128xf32>
    tpu.vector_store %arg12[%c0_192, %c0_193], %489 {strides = array<i32>} : memref<8x128xf32, #tpu.memory_space<vmem>>, vector<8x128xf32>,
    return
  }
}

</mosaic_0001>

<bundles_post_ra>
// kernel: global_attention_pallas.1
= control target key start
LH: loop header
LB: loop body
LE: loop exit
PB: predicated region body
PF: predicated region fallthrough
CT: control target
= control target key end

     0   :  { %17 = vsyncpa [#allocation3], 0  ;;  %s4272_s0 = inlined_call_operand.vmem [shape: bf16[64,16], index: 0, kind: input, shape index: {}]   ;;  %s4273_s1 = inlined_call_operand.hbm [shape: bf16[16,128], index: 1, kind: input, shape index: {}]   ;;  %s4274_s2 = inlined_call_operand.vmem [shape: bf16[128,128], index: 2, kind: input, shape index: {}]   ;;  %s4275_s3 = inlined_call_operand.vmem [shape: f32[1,128], index: 3, kind: input, shape index: {}]   ;;  %s4276_s4 = inlined_call_operand.vmem [shape: f32[1,128], index: 4, kind: input, shape index: {}]   ;;  %s4277_s5 = inlined_call_operand.vmem [shape: bf16[128,128], index: 5, kind: input, shape index: {}]   ;;  %s4278_s6 = inlined_call_operand.hbm [shape: bf16[128,128], index: 6, kind: input, shape index: {}]   ;;  %s4279_s7 = inlined_call_operand.hbm [shape: f32[1,128], index: 7, kind: input, shape index: {}]   ;;  %s4280_s8 = inlined_call_operand.hbm [shape: f32[1,128], index: 8, kind: input, shape index: {}]   ;;  %s4281_s9 = inlined_call_operand.vmem [shape: bf16[256,128], index: 9, kind: input, shape index: {}]   ;;  %s4282_s10 = inlined_call_operand.vmem [shape: bf16[128,128], index: 10, kind: input, shape index: {}]   ;;  %s4283_s11 = inlined_call_operand.vmem [shape: f32[1,128], index: 11, kind: input, shape index: {}]   ;;  %s4284_s12 = inlined_call_operand.vmem [shape: f32[8,128], index: 12, kind: output, shape index: {}]  }
   0x1   :  { %18 = vsyncpa [#allocation5], 0 }
   0x2   :  { %19 = vsyncpa [#allocation8], 0  ;;  %s3196_s21 = smov [#allocation4]   ;;  %s3197_s23 = smov [#allocation2]  }
   0x3   :  { %s47_s22 = sshll.u32 %s3196_s21, 4  ;;  %s27_s24 = sshll.u32 %s3197_s23, 4  ;;  %s48_s22 = int_to_ptr.vmem [resolvable:$true] %s47_s22  ;;  %s3271_s24 = int_to_ptr.vmem [resolvable:$true] %s27_s24 }
   0x4   :  { %s3102_s27 = scalar_lea.hbm %s4278_s6, 1024 }
   0x5   :  { %p3103_p0 = scmp.ne.s32.totalorder %s4278_s6, %s3102_s27  ;;  %p3106_p1 = scmp.lt.u32.totalorder %s3102_s27, %s4278_s6 }
   0x7   :  { %p3108_p2 = pnand %p3106_p1, %p3103_p0 }
   0x9   :  { %3111 = shalt.err (!%p3108_p2)
}
   0xa   :  { %s3112_s14 = scalar_lea.vmem %s48_s22, 1024  ;;  %p3117_p4 = scmp.lt.s32.totalorder %s48_s22, %s48_s22 }
   0xb   :  { %p3113_p3 = scmp.ne.s32.totalorder %s48_s22, %s3112_s14  ;;  %p3118_p5 = scmp.lt.s32.totalorder %s3112_s14, %s3112_s14 }
   0xd   :  { %p3119_p6 = por %p3118_p5, %p3117_p4 }
   0xf   :  { %p3120_p7 = pnand %p3119_p6, %p3113_p3 }
  0x11   :  { %3123 = shalt.err (!%p3120_p7)
}
  0x12   :  { %s3198_s15 = smov 64   ;;  %s3199_s16 = smov 4  }
  0x13   :  { %53 = dma.hbm_to_vmem [thread:$0]  %s4278_s6, 1024, %s48_s22, [#allocation5], %s3198_s15, %s3198_s15, %s3199_s16  }
  0x14   :  { %s3124_s21 = scalar_lea.hbm %s4273_s1, 128 }
  0x15   :  { %p3125_p8 = scmp.ne.s32.totalorder %s4273_s1, %s3124_s21  ;;  %p3128_p9 = scmp.lt.u32.totalorder %s3124_s21, %s4273_s1 }
  0x17   :  { %p3130_p10 = pnand %p3128_p9, %p3125_p8 }
  0x19   :  { %3133 = shalt.err (!%p3130_p10)
}
  0x1a   :  { %s3134_s28 = scalar_lea.vmem %s3271_s24, 128  ;;  %p3139_p12 = scmp.lt.s32.totalorder %s3271_s24, %s3271_s24 }
  0x1b   :  { %p3135_p11 = scmp.ne.s32.totalorder %s3271_s24, %s3134_s28  ;;  %p3140_p13 = scmp.lt.s32.totalorder %s3134_s28, %s3134_s28 }
  0x1d   :  { %p3141_p0 = por %p3140_p13, %p3139_p12 }
  0x1f   :  { %p3142_p1 = pnand %p3141_p0, %p3135_p11 }
  0x21   :  { %3145 = shalt.err (!%p3142_p1)
}
  0x22   :  { %33 = dma.hbm_to_vmem [thread:$0]  %s4273_s1, 128, %s3271_s24, [#allocation3], %s3198_s15, %s3198_s15, %s3199_s16  }
  0x23   :  { %s3200_s29 = smov [#allocation6]   ;;  %s3201_s13 = smov [#allocation7]  }
  0x24   :  { %s60_s30 = sshll.u32 %s3200_s29, 4  ;;  %s70_s14 = sshll.u32 %s3201_s13, 4  ;;  %s61_s30 = int_to_ptr.vmem [resolvable:$true] %s60_s30  ;;  %s71_s14 = int_to_ptr.vmem [resolvable:$true] %s70_s14 }
  0x25   :  { %s3146_s19 = scalar_lea.hbm %s4279_s7, 16 }
  0x26   :  { %p3147_p2 = scmp.ne.s32.totalorder %s4279_s7, %s3146_s19  ;;  %p3150_p3 = scmp.lt.u32.totalorder %s3146_s19, %s4279_s7 }
  0x28   :  { %p3152_p4 = pnand %p3150_p3, %p3147_p2 }
  0x2a   :  { %3155 = shalt.err (!%p3152_p4)
}
  0x2b   :  { %s3156_s1 = scalar_lea.vmem %s61_s30, 16  ;;  %s3160_s24 = scalar_lea.vmem %s61_s30, 32 }
  0x2c   :  { %p3157_p5 = scmp.ne.s32.totalorder %s61_s30, %s3156_s1  ;;  %p3161_p6 = scmp.lt.s32.totalorder %s61_s30, %s61_s30 }
  0x2d   :  { %p3162_p7 = scmp.lt.s32.totalorder %s3160_s24, %s3156_s1 }
  0x2f   :  { %p3163_p8 = por %p3162_p7, %p3161_p6 }
  0x31   :  { %p3164_p9 = pnand %p3163_p8, %p3157_p5 }
  0x33   :  { %3167 = shalt.err (!%p3164_p9)
}
  0x34   :  { %63 = dma.hbm_to_vmem [thread:$0]  %s4279_s7, 16, %s61_s30, [#allocation5]  }
  0x35   :  { %s3168_s6 = scalar_lea.hbm %s4280_s8, 16 }
  0x36   :  { %p3169_p10 = scmp.ne.s32.totalorder %s4280_s8, %s3168_s6  ;;  %p3172_p11 = scmp.lt.u32.totalorder %s3168_s6, %s4280_s8 }
  0x38   :  { %p3174_p12 = pnand %p3172_p11, %p3169_p10 }
  0x3a   :  { %3177 = shalt.err (!%p3174_p12)
}
  0x3b   :  { %s3178_s18 = scalar_lea.vmem %s71_s14, 16  ;;  %s3182_s19 = scalar_lea.vmem %s71_s14, 32 }
  0x3c   :  { %p3179_p13 = scmp.ne.s32.totalorder %s71_s14, %s3178_s18  ;;  %p3183_p0 = scmp.lt.s32.totalorder %s71_s14, %s71_s14 }
  0x3d   :  { %p3184_p1 = scmp.lt.s32.totalorder %s3182_s19, %s3178_s18 }
  0x3f   :  { %p3185_p2 = por %p3184_p1, %p3183_p0 }
  0x41   :  { %p3186_p3 = pnand %p3185_p2, %p3179_p13 }
  0x43   :  { %3189 = shalt.err (!%p3186_p3)
}
  0x44   :  { %73 = dma.hbm_to_vmem [thread:$0]  %s4280_s8, 16, %s71_s14, [#allocation8]  }
  0x45   :  { %3190 = dma.done.wait [#allocation3], 128  }
  0x46   :  { %3191 = vsyncadd [#allocation3], 4294967168 }
  0x47   :  { %3192 = dma.done.wait [#allocation5], 1040  }
  0x48   :  { %3193 = vsyncadd [#allocation5], 4294966256 }
  0x49   :  { %3194 = dma.done.wait [#allocation8], 16  }
  0x4a   :  { %3195 = vsyncadd [#allocation8], 4294967280  ;;  %v3202_v0 = vmov 0.0   ;;  %vm3203_vm0 = vmmov 0   ;;  %v3336_v1 = vld [vmem:[%s4274_s2] sm:$0xff]   ;;  %v3342_v2 = vld [vmem:[%s4274_s2 + $0x8] sm:$0xff]  }
  0x4b   :  { %2397 = vmatprep.subr.bf16.mxu1 %v3202_v0  ;;  %2413 = vmatprep.mubr.msk.bf16.mxu1 %vm3203_vm0, %v3202_v0  ;;  %v3348_v3 = vld [vmem:[%s4274_s2 + $0x10] sm:$0xff]   ;;  %v2913_v4 = vld [vmem:[#allocation2] sm:$0xff]   ;;  %vm136_vm1 = vcmask 130048   ;;  %v2916_v6 = vld [vmem:[%s4272_s0 + $0x8] sm:$0xff]   ;;  %v3204_v12 = vmov 0  }
  0x4c   :  { %2398 = vmatpush3.bf16.msra.mxu1 %v3336_v1  ;;  %2387 = vmatprep.subr.bf16.mxu0 %v2913_v4  ;;  %v2915_v5 = vld [vmem:[%s4272_s0] sm:$0xff]   ;;  %v3362_v7 = vld [vmem:[%s4274_s2 + $0x18] sm:$0xff]   ;;  %v3378_v9 = vld [vmem:[%s4274_s2 + $0x28] sm:$0xff]  }
  0x4d   :  { %2399 = vmatprep.subr.bf16.mxu1 %v3202_v0  ;;  %2388 = vmatpush3.bf16.msra.mxu0 %v2913_v4  ;;  %v3370_v8 = vld [vmem:[%s4274_s2 + $0x20] sm:$0xff]   ;;  %v3385_v10 = vld [vmem:[%s4274_s2 + $0x30] sm:$0xff]   ;;  %v3392_v11 = vld [vmem:[%s4274_s2 + $0x38] sm:$0xff]  }
  0x4e   :  { %2389 = vmatprep.mubr.msk.bf16.mxu0 %vm136_vm1, %v2915_v5  ;;  %2417 = vmatprep.subr.bf16.mxu0 %v3202_v0  ;;  %v3404_v13 = vld [vmem:[%s4277_s5] sm:$0xff]   ;;  %v3406_v14 = vld [vmem:[#allocation4] sm:$0xff]   ;;  %v3415_v16 = vld [vmem:[#allocation4 + $0x8] sm:$0xff]  }
  0x4f   :  { %v3413_v15 = vld [vmem:[%s4277_s5 + $0x8] sm:$0xff]   ;;  %v3424_v17 = vld [vmem:[%s4277_s5 + $0x10] sm:$0xff]   ;;  %v3439_v22 = vld [vmem:[%s4275_s3] ss:$0 sm:$0xff] }
  0x50   :  { %2400 = vmatpush3.bf16.msra.mxu1 %v3342_v2  ;;  %2390 = vmatmul.mubr.msk.bf16.vlgmr.msra.gmra.mrb[0].mxu0 %vm136_vm1, %v2916_v6  ;;  %v3444_v23 = vld [vmem:[%s4276_s4] ss:$0 sm:$0xff]  ;;  %v3454_v32 = vld [vmem:[#allocation4 + $0x10] sm:$0xff]   ;;  %v3474_v38 = vld [vmem:[#allocation4 + $0x20] sm:$0xff]  }
  0x51   :  { %2401 = vmatprep.subr.bf16.mxu1 %v3202_v0  ;;  %2418 = vmatpush3.bf16.msra.mxu0 %v3404_v13  ;;  %v3460_v35 = vld [vmem:[%s4277_s5 + $0x18] sm:$0xff]   ;;  %v3463_v36 = vld [vmem:[#allocation4 + $0x18] sm:$0xff]   ;;  %v2928_v39 = vld [vmem:[%s4272_s0 + $0x10] sm:$0xff]  }
  0x52   :  { %2419 = vmatprep.subr.bf16.mxu0 %v3202_v0  ;;  %v3471_v37 = vld [vmem:[%s4277_s5 + $0x20] sm:$0xff]   ;;  %v3485_v40 = vld [vmem:[%s4277_s5 + $0x28] sm:$0xff]   ;;  %v2930_v41 = vld [vmem:[%s4272_s0 + $0x18] sm:$0xff]   ;;  %2393 = vmatprep.mubr.msk.bf16.mxu0 %vm136_vm1, %v2928_v39  ;;  %s3205_s0 = smov 32  }
  0x53   :  { %v3491_v42 = vld [vmem:[#allocation4 + $0x28] sm:$0xff]   ;;  %v3505_v45 = vld [vmem:[#allocation4 + $0x30] sm:$0xff]   ;;  %v3519_v47 = vld [vmem:[#allocation4 + $0x38] sm:$0xff]  }
  0x54   :  { %2402 = vmatpush3.bf16.msra.mxu1 %v3348_v3  ;;  %v3502_v44 = vld [vmem:[%s4277_s5 + $0x30] sm:$0xff]   ;;  %v3516_v46 = vld [vmem:[%s4277_s5 + $0x38] sm:$0xff]   ;;  %v3594_v5 = vld [vmem:[#allocation7] ss:$0 sm:$0xff] }
  0x55   :  { %2403 = vmatprep.subr.bf16.mxu1 %v3202_v0  ;;  %2420 = vmatpush3.bf16.msra.mxu0 %v3413_v15  ;;  %v3596_v6 = vld [vmem:[#allocation6] ss:$0 sm:$0xff] }
  0x56   :  { %2421 = vmatprep.subr.bf16.mxu0 %v3202_v0 }
  0x58   :  { %2404 = vmatpush3.bf16.msra.mxu1 %v3362_v7  ;;  %2394 = vmatmul.mubr.msk.bf16.gmra.mrb[4].mxu0 %vm136_vm1, %v2930_v41 }
  0x59   :  { %2405 = vmatprep.subr.bf16.mxu1 %v3202_v0  ;;  %2422 = vmatpush3.bf16.msra.mxu0 %v3424_v17 }
  0x5a   :  { %2423 = vmatprep.subr.bf16.mxu0 %v3202_v0  ;;  %2433 = vmatprep.mubr.msk.bf16.mxu0 %vm3203_vm0, %v3202_v0 }
  0x5c   :  { %2406 = vmatpush3.bf16.msra.mxu1 %v3370_v8 }
  0x5d   :  { %2407 = vmatprep.subr.bf16.mxu1 %v3202_v0  ;;  %2424 = vmatpush3.bf16.msra.mxu0 %v3460_v35 }
  0x5e   :  { %2425 = vmatprep.subr.bf16.mxu0 %v3202_v0 }
  0x60   :  { %2408 = vmatpush3.bf16.msra.mxu1 %v3378_v9 }
  0x61   :  { %2409 = vmatprep.subr.bf16.mxu1 %v3202_v0  ;;  %2426 = vmatpush3.bf16.msra.mxu0 %v3471_v37 }
  0x62   :  { %2427 = vmatprep.subr.bf16.mxu0 %v3202_v0 }
  0x64   :  { %2410 = vmatpush3.bf16.msra.mxu1 %v3385_v10 }
  0x65   :  { %2411 = vmatprep.subr.bf16.mxu1 %v3202_v0  ;;  %2428 = vmatpush3.bf16.msra.mxu0 %v3485_v40 }
  0x66   :  { %2429 = vmatprep.subr.bf16.mxu0 %v3202_v0 }
  0x68   :  { %2412 = vmatpush3.bf16.msra.mxu1 %v3392_v11 }
  0x69   :  { %2437 = vmatprep.subr.bf16.mxu1 %v3202_v0  ;;  %2430 = vmatpush3.bf16.msra.mxu0 %v3502_v44 }
  0x6a   :  { %2431 = vmatprep.subr.bf16.mxu0 %v3202_v0 }
  0x6b   :  { %2414 = vmatmul.mubr.bf16.vlgmr.msra.gmra.mrb[0].mxu1 %v3204_v12 }
  0x6c   :  { %2453 = vmatprep.mubr.msk.bf16.mxu1 %vm3203_vm0, %v3202_v0  ;;  %2438 = vmatpush3.bf16.msra.mxu1 %v3406_v14 }
  0x6d   :  { %2439 = vmatprep.subr.bf16.mxu1 %v3202_v0  ;;  %2432 = vmatpush3.bf16.msra.mxu0 %v3516_v46 }
  0x6e   :  { %2457 = vmatprep.subr.bf16.mxu0 %v3202_v0 }
  0x70   :  { %2440 = vmatpush3.bf16.msra.mxu1 %v3415_v16 }
  0x71   :  { %2441 = vmatprep.subr.bf16.mxu1 %v3202_v0 }
  0x74   :  { %2442 = vmatpush3.bf16.msra.mxu1 %v3454_v32 }
  0x75   :  { %2443 = vmatprep.subr.bf16.mxu1 %v3202_v0 }
  0x78   :  { %2444 = vmatpush3.bf16.msra.mxu1 %v3463_v36 }
  0x79   :  { %2445 = vmatprep.subr.bf16.mxu1 %v3202_v0 }
  0x7c   :  { %2446 = vmatpush3.bf16.msra.mxu1 %v3474_v38 }
  0x7d   :  { %2447 = vmatprep.subr.bf16.mxu1 %v3202_v0 }
  0x80   :  { %2448 = vmatpush3.bf16.msra.mxu1 %v3491_v42 }
  0x81   :  { %2449 = vmatprep.subr.bf16.mxu1 %v3202_v0 }
  0x84   :  { %2450 = vmatpush3.bf16.msra.mxu1 %v3505_v45 }
  0x85   :  { %2451 = vmatprep.subr.bf16.mxu1 %v3202_v0 }
  0x88   :  { %2452 = vmatpush3.bf16.msra.mxu1 %v3519_v47 }
  0x89   :  { %2477 = vmatprep.subr.bf16.mxu1 %v3202_v0 }
  0x8b   :  { %2454 = vmatmul.mubr.bf16.vlgmr.msra.gmra.mrb[4].mxu1 %v3204_v12 }
  0x8c   :  { %2478 = vmatpush3.bf16.msra.mxu1 %v3404_v13  ;;  %2493 = vmatprep.mubr.msk.bf16.mxu1 %vm3203_vm0, %v3202_v0 }
  0x8d   :  { %2479 = vmatprep.subr.bf16.mxu1 %v3202_v0 }
  0x90   :  { %2480 = vmatpush3.bf16.msra.mxu1 %v3413_v15 }
  0x91   :  { %2481 = vmatprep.subr.bf16.mxu1 %v3202_v0 }
  0x94   :  { %2482 = vmatpush3.bf16.msra.mxu1 %v3424_v17 }
  0x95   :  { %2483 = vmatprep.subr.bf16.mxu1 %v3202_v0 }
  0x98   :  { %2484 = vmatpush3.bf16.msra.mxu1 %v3460_v35 }
  0x99   :  { %2485 = vmatprep.subr.bf16.mxu1 %v3202_v0 }
  0x9c   :  { %2486 = vmatpush3.bf16.msra.mxu1 %v3471_v37 }
  0x9d   :  { %2487 = vmatprep.subr.bf16.mxu1 %v3202_v0 }
  0xa0   :  { %2488 = vmatpush3.bf16.msra.mxu1 %v3485_v40 }
  0xa1   :  { %2489 = vmatprep.subr.bf16.mxu1 %v3202_v0 }
  0xa4   :  { %2490 = vmatpush3.bf16.msra.mxu1 %v3502_v44 }
  0xa5   :  { %2491 = vmatprep.subr.bf16.mxu1 %v3202_v0 }
  0xa8   :  { %2492 = vmatpush3.bf16.msra.mxu1 %v3516_v46 }
  0xa9   :  { %2517 = vmatprep.subr.bf16.mxu1 %v3202_v0 }
 0x123   :  { %v3430_v18 = vpop.f32.mrb[0].mxu0 }
 0x124   :  { %v183_v19 = vpop.f32.mrb[1].mxu0 }
 0x125   :  { %v3432_v20 = vpop.f32.mrb[2].mxu0  ;;  %v3447_v24 = vadd.f32 %v3439_v22, %v183_v19 }
 0x126   :  { %v3434_v21 = vpop.f32.mrb[3].mxu0 }
 0x127   :  { %v187_v39 = vadd.f32 %v3439_v22, %v3434_v21 }
 0x12b   :  { %v3586_v57 = vpop.f32.mrb[4].mxu0 }
 0x12c   :  { %v3588_v58 = vpop.f32.mrb[5].mxu0 }
 0x12d   :  { %v3590_v59 = vpop.f32.mrb[6].mxu0 }
 0x12e   :  { %v3592_v60 = vpop.f32.mrb[7].mxu0 }
 0x13e   :  { %v319_v25 = vpop.f32.mrb[0].mxu1 }
 0x13f   :  { %v3450_v26 = vadd.f32 %v3444_v23, %v319_v25  ;;  %v2415_v27 = vpop.f32.mrb[1].mxu1 }
 0x140   :  { %v322_v28 = vpop.f32.mrb[2].mxu1 }
 0x141   :  { %v325_v29 = vadd.f32 %v3450_v26, %v3447_v24  ;;  %v2416_v30 = vpop.f32.mrb[3].mxu1 }
 0x143   :  { %v2076_v31 = vmul.f32 -1.442695, %v325_v29 }
 0x145   :  { %2960 = vpow2.f32 %v2076_v31 }
 0x14f   :  { %v2961_v33 = vpop.eup %2960 }
 0x150   :  { %v329_v34 = vadd.f32 1.0, %v2961_v33 }
 0x152   :  { %2962 = vrcp.f32 %v329_v34 }
 0x15c   :  { %v2963_v43 = vpop.eup %2962 }
 0x15d   :  { %332 = vrot.lane.b32.xlu0 %v2963_v43, %s3198_s15 }
 0x15e   :  { %v559_v61 = vpop.f32.mrb[4].mxu1 }
 0x15f   :  { %v2455_v62 = vpop.f32.mrb[5].mxu1  ;;  %v560_v12 = vadd.f32 %v3594_v5, %v559_v61 }
 0x160   :  { %v562_v63 = vpop.f32.mrb[6].mxu1 }
 0x161   :  { %337 = vrot.lane.b32.xlu0 %v2963_v43, %s3205_s0  ;;  %v2456_v4 = vpop.f32.mrb[7].mxu1 }
 0x1cf   :  { %v333_v48 = vpop.permute.xlu0 %332 }
 0x1d0   :  { %v334_v49 = vmul.f32 %v333_v48, %v3450_v26 }
 0x1d2   :  { %v335_v50 = vadd.f32 %v334_v49, %v3447_v24 }
 0x1d3   :  { %v338_v53 = vpop.permute.xlu0 %337 }
 0x1d4   :  { %2964 = vtanh.f32 %v335_v50 }
 0x1de   :  { %v2965_v51 = vpop.eup %2964 }
 0x1df   :  { %v339_v52 = vsub.f32 0.0, %v2965_v51 }
 0x1e1   :  { %v340_v54 = vmul.f32 %v339_v52, %v338_v53 }
 0x1e3   :  { %v3546_v55 = vadd.f32 %v2965_v51, %v340_v54 }
 0x1e5   :  { %v342_v56 = vpack.c.bf16 %v3546_v55, %v3546_v55 }
 0x1e7   :  { %2434 = vmatmul.mubr.bf16.vlgmr.msra.gmra.mrb[8].mxu0 %v342_v56 }
 0x1e8   :  { %2458 = vmatpush3.bf16.msra.mxu0 %v3336_v1  ;;  %2473 = vmatprep.mubr.msk.bf16.mxu0 %vm3203_vm0, %v3202_v0 }
 0x1e9   :  { %2459 = vmatprep.subr.bf16.mxu0 %v3202_v0 }
 0x1ec   :  { %2460 = vmatpush3.bf16.msra.mxu0 %v3342_v2 }
 0x1ed   :  { %2461 = vmatprep.subr.bf16.mxu0 %v3202_v0 }
 0x1f0   :  { %2462 = vmatpush3.bf16.msra.mxu0 %v3348_v3 }
 0x1f1   :  { %2463 = vmatprep.subr.bf16.mxu0 %v3202_v0 }
 0x1f4   :  { %2464 = vmatpush3.bf16.msra.mxu0 %v3362_v7 }
 0x1f5   :  { %2465 = vmatprep.subr.bf16.mxu0 %v3202_v0 }
 0x1f8   :  { %2466 = vmatpush3.bf16.msra.mxu0 %v3370_v8 }
 0x1f9   :  { %2467 = vmatprep.subr.bf16.mxu0 %v3202_v0 }
 0x1fc   :  { %2468 = vmatpush3.bf16.msra.mxu0 %v3378_v9 }
 0x1fd   :  { %2469 = vmatprep.subr.bf16.mxu0 %v3202_v0 }
 0x200   :  { %2470 = vmatpush3.bf16.msra.mxu0 %v3385_v10 }
 0x201   :  { %2471 = vmatprep.subr.bf16.mxu0 %v3202_v0 }
 0x204   :  { %2472 = vmatpush3.bf16.msra.mxu0 %v3392_v11 }
 0x205   :  { %2497 = vmatprep.subr.bf16.mxu0 %v3202_v0 }
 0x207   :  { %2474 = vmatmul.mubr.bf16.vlgmr.msra.gmra.mrb[12].mxu0 %v342_v56 }
 0x208   :  { %2498 = vmatpush3.bf16.msra.mxu0 %v3406_v14  ;;  %2513 = vmatprep.mubr.msk.bf16.mxu0 %vm3203_vm0, %v3202_v0 }
 0x209   :  { %2499 = vmatprep.subr.bf16.mxu0 %v3202_v0 }
 0x20c   :  { %2500 = vmatpush3.bf16.msra.mxu0 %v3415_v16 }
 0x20d   :  { %2501 = vmatprep.subr.bf16.mxu0 %v3202_v0 }
 0x210   :  { %2502 = vmatpush3.bf16.msra.mxu0 %v3454_v32 }
 0x211   :  { %2503 = vmatprep.subr.bf16.mxu0 %v3202_v0 }
 0x214   :  { %2504 = vmatpush3.bf16.msra.mxu0 %v3463_v36 }
 0x215   :  { %2505 = vmatprep.subr.bf16.mxu0 %v3202_v0 }
 0x218   :  { %2506 = vmatpush3.bf16.msra.mxu0 %v3474_v38 }
 0x219   :  { %2507 = vmatprep.subr.bf16.mxu0 %v3202_v0 }
 0x21c   :  { %2508 = vmatpush3.bf16.msra.mxu0 %v3491_v42 }
 0x21d   :  { %2509 = vmatprep.subr.bf16.mxu0 %v3202_v0 }
 0x220   :  { %2510 = vmatpush3.bf16.msra.mxu0 %v3505_v45 }
 0x221   :  { %2511 = vmatprep.subr.bf16.mxu0 %v3202_v0 }
 0x224   :  { %2512 = vmatpush3.bf16.msra.mxu0 %v3519_v47 }
 0x225   :  { %2537 = vmatprep.subr.bf16.mxu0 %v3202_v0 }
 0x2ba   :  { %v448_v19 = vpop.f32.mrb[8].mxu0 }
 0x2bb   :  { %v449_v24 = vadd.f32 %v3596_v6, %v448_v19  ;;  %v2435_v25 = vpop.f32.mrb[9].mxu0 }
 0x2bc   :  { %v451_v26 = vpop.f32.mrb[10].mxu0 }
 0x2bd   :  { %v565_v27 = vadd.f32 %v560_v12, %v449_v24  ;;  %v2436_v28 = vpop.f32.mrb[11].mxu0 }
 0x2bf   :  { %v2095_v29 = vmul.f32 -1.442695, %v565_v27 }
 0x2c1   :  { %2966 = vpow2.f32 %v2095_v29 }
 0x2cb   :  { %v2967_v30 = vpop.eup %2966 }
 0x2cc   :  { %v569_v31 = vadd.f32 1.0, %v2967_v30 }
 0x2ce   :  { %2968 = vrcp.f32 %v569_v31 }
 0x2d8   :  { %v2969_v33 = vpop.eup %2968 }
 0x2d9   :  { %572 = vrot.lane.b32.xlu0 %v2969_v33, %s3198_s15 }
 0x2da   :  { %v616_v34 = vpop.f32.mrb[12].mxu0 }
 0x2db   :  { %v617_v41 = vadd.f32 %v3444_v23, %v616_v34  ;;  %v2475_v43 = vpop.f32.mrb[13].mxu0 }
 0x2dc   :  { %v619_v48 = vpop.f32.mrb[14].mxu0 }
 0x2dd   :  { %v622_v49 = vadd.f32 %v617_v41, %v187_v39  ;;  %v2476_v50 = vpop.f32.mrb[15].mxu0 }
 0x2df   :  { %v2096_v51 = vmul.f32 -1.442695, %v622_v49 }
 0x2e1   :  { %2970 = vpow2.f32 %v2096_v51 }
 0x2eb   :  { %v2971_v52 = vpop.eup %2970 }
 0x2ec   :  { %v626_v53 = vadd.f32 1.0, %v2971_v52 }
 0x2ee   :  { %2972 = vrcp.f32 %v626_v53 }
 0x2f8   :  { %v2973_v54 = vpop.eup %2972 }
 0x2f9   :  { %629 = vrot.lane.b32.xlu1 %v2973_v54, %s3198_s15 }
 0x2fd   :  { %634 = vrot.lane.b32.xlu1 %v2973_v54, %s3205_s0 }
 0x301   :  { %577 = vrot.lane.b32.xlu1 %v2969_v33, %s3205_s0 }
 0x34b   :  { %v573_v56 = vpop.permute.xlu0 %572 }
 0x34c   :  { %v574_v21 = vmul.f32 %v573_v56, %v560_v12 }
 0x34e   :  { %v575_v61 = vadd.f32 %v574_v21, %v449_v24  ;;  %v192_v21 = vadd.f32 %v3430_v18, %v3439_v22 }
 0x350   :  { %2974 = vtanh.f32 %v575_v61 }
 0x35a   :  { %v2975_v19 = vpop.eup %2974 }
 0x35b   :  { %v579_v26 = vsub.f32 0.0, %v2975_v19 }
 0x36b   :  { %v630_v62 = vpop.permute.xlu1 %629 }
 0x36c   :  { %v631_v63 = vmul.f32 %v630_v62, %v617_v41 }
 0x36e   :  { %v632_v4 = vadd.f32 %v631_v63, %v187_v39 }
 0x36f   :  { %v635_v25 = vpop.permute.xlu1 %634 }
 0x370   :  { %2976 = vtanh.f32 %v632_v4 }
 0x373   :  { %v578_v27 = vpop.permute.xlu1 %577 }
 0x374   :  { %v580_v28 = vmul.f32 %v579_v26, %v578_v27 }
 0x376   :  { %v3607_v29 = vadd.f32 %v2975_v19, %v580_v28 }
 0x378   :  { %v680_v30 = vpack.c.bf16 %v3607_v29, %v3607_v29 }
 0x37a   :  { %v2977_v31 = vpop.eup %2976  ;;  %2514 = vmatmul.mubr.bf16.vlgmr.msra.gmra.mrb[16].mxu0 %v680_v30 }
 0x37b   :  { %v636_v12 = vsub.f32 %v3546_v55, %v2977_v31  ;;  %2538 = vmatpush3.bf16.msra.mxu0 %v3404_v13  ;;  %2553 = vmatprep.mubr.msk.bf16.mxu0 %vm3203_vm0, %v3202_v0 }
 0x37c   :  { %2539 = vmatprep.subr.bf16.mxu0 %v3202_v0 }
 0x37d   :  { %v637_v24 = vmul.f32 %v636_v12, %v635_v25 }
 0x37f   :  { %v3616_v33 = vadd.f32 %v2977_v31, %v637_v24  ;;  %2540 = vmatpush3.bf16.msra.mxu0 %v3413_v15 }
 0x380   :  { %2541 = vmatprep.subr.bf16.mxu0 %v3202_v0 }
 0x381   :  { %v639_v34 = vpack.c.bf16 %v3616_v33, %v3616_v33 }
 0x383   :  { %2494 = vmatmul.mubr.bf16.vlgmr.msra.gmra.mrb[8].mxu1 %v639_v34  ;;  %2542 = vmatpush3.bf16.msra.mxu0 %v3424_v17 }
 0x384   :  { %2518 = vmatpush3.bf16.msra.mxu1 %v3336_v1  ;;  %2533 = vmatprep.mubr.msk.bf16.mxu1 %vm3203_vm0, %v3202_v0 }
 0x385   :  { %2519 = vmatprep.subr.bf16.mxu1 %v3202_v0  ;;  %2543 = vmatprep.subr.bf16.mxu0 %v3202_v0 }
 0x387   :  { %2544 = vmatpush3.bf16.msra.mxu0 %v3460_v35 }
 0x388   :  { %2520 = vmatpush3.bf16.msra.mxu1 %v3342_v2  ;;  %2545 = vmatprep.subr.bf16.mxu0 %v3202_v0 }
 0x389   :  { %2521 = vmatprep.subr.bf16.mxu1 %v3202_v0 }
 0x38b   :  { %2546 = vmatpush3.bf16.msra.mxu0 %v3471_v37 }
 0x38c   :  { %2522 = vmatpush3.bf16.msra.mxu1 %v3348_v3  ;;  %2547 = vmatprep.subr.bf16.mxu0 %v3202_v0 }
 0x38d   :  { %2523 = vmatprep.subr.bf16.mxu1 %v3202_v0 }
 0x38f   :  { %2548 = vmatpush3.bf16.msra.mxu0 %v3485_v40 }
 0x390   :  { %2524 = vmatpush3.bf16.msra.mxu1 %v3362_v7  ;;  %2549 = vmatprep.subr.bf16.mxu0 %v3202_v0 }
 0x391   :  { %2525 = vmatprep.subr.bf16.mxu1 %v3202_v0 }
 0x393   :  { %2550 = vmatpush3.bf16.msra.mxu0 %v3502_v44 }
 0x394   :  { %2526 = vmatpush3.bf16.msra.mxu1 %v3370_v8  ;;  %2551 = vmatprep.subr.bf16.mxu0 %v3202_v0 }
 0x395   :  { %2527 = vmatprep.subr.bf16.mxu1 %v3202_v0 }
 0x397   :  { %2552 = vmatpush3.bf16.msra.mxu0 %v3516_v46 }
 0x398   :  { %2528 = vmatpush3.bf16.msra.mxu1 %v3378_v9  ;;  %2577 = vmatprep.subr.bf16.mxu0 %v3202_v0 }
 0x399   :  { %2529 = vmatprep.subr.bf16.mxu1 %v3202_v0 }
 0x39c   :  { %2530 = vmatpush3.bf16.msra.mxu1 %v3385_v10 }
 0x39d   :  { %2531 = vmatprep.subr.bf16.mxu1 %v3202_v0 }
 0x3a0   :  { %2532 = vmatpush3.bf16.msra.mxu1 %v3392_v11 }
 0x3a1   :  { %2557 = vmatprep.subr.bf16.mxu1 %v3202_v0 }
 0x3a3   :  { %2534 = vmatmul.mubr.bf16.vlgmr.msra.gmra.mrb[12].mxu1 %v639_v34 }
 0x3a4   :  { %2558 = vmatpush3.bf16.msra.mxu1 %v3406_v14  ;;  %2573 = vmatprep.mubr.msk.bf16.mxu1 %vm3203_vm0, %v3202_v0 }
 0x3a5   :  { %2559 = vmatprep.subr.bf16.mxu1 %v3202_v0 }
 0x3a8   :  { %2560 = vmatpush3.bf16.msra.mxu1 %v3415_v16 }
 0x3a9   :  { %2561 = vmatprep.subr.bf16.mxu1 %v3202_v0 }
 0x3ac   :  { %2562 = vmatpush3.bf16.msra.mxu1 %v3454_v32 }
 0x3ad   :  { %2563 = vmatprep.subr.bf16.mxu1 %v3202_v0 }
 0x3b0   :  { %2564 = vmatpush3.bf16.msra.mxu1 %v3463_v36 }
 0x3b1   :  { %2565 = vmatprep.subr.bf16.mxu1 %v3202_v0 }
 0x3b4   :  { %2566 = vmatpush3.bf16.msra.mxu1 %v3474_v38 }
 0x3b5   :  { %2567 = vmatprep.subr.bf16.mxu1 %v3202_v0 }
 0x3b8   :  { %2568 = vmatpush3.bf16.msra.mxu1 %v3491_v42 }
 0x3b9   :  { %2569 = vmatprep.subr.bf16.mxu1 %v3202_v0 }
 0x3bc   :  { %2570 = vmatpush3.bf16.msra.mxu1 %v3505_v45 }
 0x3bd   :  { %2571 = vmatprep.subr.bf16.mxu1 %v3202_v0 }
 0x3c0   :  { %2572 = vmatpush3.bf16.msra.mxu1 %v3519_v47 }
 0x3c1   :  { %2597 = vmatprep.subr.bf16.mxu1 %v3202_v0 }
 0x44d   :  { %v715_v55 = vpop.f32.mrb[16].mxu0 }
 0x44e   :  { %v2515_v39 = vpop.f32.mrb[17].mxu0  ;;  %v716_v53 = vadd.f32 %v3594_v5, %v715_v55 }
 0x44f   :  { %v718_v41 = vpop.f32.mrb[18].mxu0 }
 0x450   :  { %v2516_v43 = vpop.f32.mrb[19].mxu0 }
 0x456   :  { %v674_v48 = vpop.f32.mrb[8].mxu1 }
 0x457   :  { %v2495_v49 = vpop.f32.mrb[9].mxu1  ;;  %v675_v52 = vadd.f32 %v3596_v6, %v674_v48 }
 0x458   :  { %v677_v50 = vpop.f32.mrb[10].mxu1 }
 0x459   :  { %v2496_v51 = vpop.f32.mrb[11].mxu1  ;;  %v721_v54 = vadd.f32 %v716_v53, %v675_v52 }
 0x45b   :  { %v2097_v63 = vmul.f32 -1.442695, %v721_v54 }
 0x45d   :  { %2978 = vpow2.f32 %v2097_v63 }
 0x467   :  { %v2979_v27 = vpop.eup %2978 }
 0x468   :  { %v725_v31 = vadd.f32 1.0, %v2979_v27 }
 0x476   :  { %v772_v56 = vpop.f32.mrb[12].mxu1 }
 0x477   :  { %v773_v61 = vadd.f32 %v3444_v23, %v772_v56  ;;  %v2535_v62 = vpop.f32.mrb[13].mxu1 }
 0x478   :  { %v775_v4 = vpop.f32.mrb[14].mxu1 }
 0x479   :  { %v778_v19 = vadd.f32 %v773_v61, %v192_v21  ;;  %v2536_v25 = vpop.f32.mrb[15].mxu1 }
 0x47b   :  { %v2098_v26 = vmul.f32 -1.442695, %v778_v19 }
 0x47d   :  { %2980 = vpow2.f32 %v2098_v26 }
 0x487   :  { %v2981_v28 = vpop.eup %2980 }
 0x488   :  { %v782_v30 = vadd.f32 1.0, %v2981_v28  ;;  %v195_v28 = vadd.f32 %v3432_v20, %v3439_v22 }
 0x48a   :  { %2982 = vrcp.f32 %v782_v30 }
 0x48b   :  { %2984 = vrcp.f32 %v725_v31 }
 0x494   :  { %v2983_v12 = vpop.eup %2982 }
 0x495   :  { %790 = vrot.lane.b32.xlu1 %v2983_v12, %s3205_s0  ;;  %785 = vrot.lane.b32.xlu0 %v2983_v12, %s3198_s15  ;;  %v2985_v18 = vpop.eup %2984 }
 0x499   :  { %733 = vrot.lane.b32.xlu1 %v2985_v18, %s3205_s0  ;;  %728 = vrot.lane.b32.xlu0 %v2985_v18, %s3198_s15 }
 0x507   :  { %v786_v24 = vpop.permute.xlu0 %785  ;;  %v791_v49 = vpop.permute.xlu1 %790 }
 0x508   :  { %v787_v34 = vmul.f32 %v786_v24, %v773_v61 }
 0x50a   :  { %v788_v55 = vadd.f32 %v787_v34, %v192_v21 }
 0x50b   :  { %v729_v39 = vpop.permute.xlu0 %728  ;;  %v734_v63 = vpop.permute.xlu1 %733 }
 0x50c   :  { %2986 = vtanh.f32 %v788_v55  ;;  %v730_v41 = vmul.f32 %v729_v39, %v716_v53 }
 0x50e   :  { %v731_v43 = vadd.f32 %v730_v41, %v675_v52 }
 0x510   :  { %2988 = vtanh.f32 %v731_v43 }
 0x516   :  { %v2987_v48 = vpop.eup %2986 }
 0x517   :  { %v792_v50 = vsub.f32 %v3616_v33, %v2987_v48 }
 0x519   :  { %v793_v51 = vmul.f32 %v792_v50, %v791_v49 }
 0x51a   :  { %v2989_v54 = vpop.eup %2988 }
 0x51b   :  { %v3680_v56 = vadd.f32 %v2987_v48, %v793_v51  ;;  %v735_v62 = vsub.f32 %v3607_v29, %v2989_v54 }
 0x51d   :  { %v795_v61 = vpack.c.bf16 %v3680_v56, %v3680_v56  ;;  %v736_v21 = vmul.f32 %v735_v62, %v734_v63 }
 0x51f   :  { %v3685_v4 = vadd.f32 %v2989_v54, %v736_v21  ;;  %2554 = vmatmul.mubr.bf16.vlgmr.msra.gmra.mrb[20].mxu0 %v795_v61 }
 0x520   :  { %2578 = vmatpush3.bf16.msra.mxu0 %v3336_v1  ;;  %2593 = vmatprep.mubr.msk.bf16.mxu0 %vm3203_vm0, %v3202_v0 }
 0x521   :  { %2579 = vmatprep.subr.bf16.mxu0 %v3202_v0  ;;  %v836_v33 = vpack.c.bf16 %v3685_v4, %v3685_v4 }
 0x523   :  { %2574 = vmatmul.mubr.bf16.vlgmr.msra.gmra.mrb[16].mxu1 %v836_v33 }
 0x524   :  { %2580 = vmatpush3.bf16.msra.mxu0 %v3342_v2  ;;  %2598 = vmatpush3.bf16.msra.mxu1 %v3404_v13 }
 0x525   :  { %2581 = vmatprep.subr.bf16.mxu0 %v3202_v0  ;;  %2599 = vmatprep.subr.bf16.mxu1 %v3202_v0 }
 0x526   :  { %2613 = vmatprep.mubr.msk.bf16.mxu1 %vm3203_vm0, %v3202_v0 }
 0x528   :  { %2582 = vmatpush3.bf16.msra.mxu0 %v3348_v3  ;;  %2600 = vmatpush3.bf16.msra.mxu1 %v3413_v15 }
 0x529   :  { %2583 = vmatprep.subr.bf16.mxu0 %v3202_v0  ;;  %2601 = vmatprep.subr.bf16.mxu1 %v3202_v0 }
 0x52c   :  { %2584 = vmatpush3.bf16.msra.mxu0 %v3362_v7  ;;  %2602 = vmatpush3.bf16.msra.mxu1 %v3424_v17 }
 0x52d   :  { %2585 = vmatprep.subr.bf16.mxu0 %v3202_v0  ;;  %2603 = vmatprep.subr.bf16.mxu1 %v3202_v0 }
 0x530   :  { %2586 = vmatpush3.bf16.msra.mxu0 %v3370_v8  ;;  %2604 = vmatpush3.bf16.msra.mxu1 %v3460_v35 }
 0x531   :  { %2587 = vmatprep.subr.bf16.mxu0 %v3202_v0  ;;  %2605 = vmatprep.subr.bf16.mxu1 %v3202_v0 }
 0x534   :  { %2588 = vmatpush3.bf16.msra.mxu0 %v3378_v9  ;;  %2606 = vmatpush3.bf16.msra.mxu1 %v3471_v37 }
 0x535   :  { %2589 = vmatprep.subr.bf16.mxu0 %v3202_v0  ;;  %2607 = vmatprep.subr.bf16.mxu1 %v3202_v0 }
 0x538   :  { %2590 = vmatpush3.bf16.msra.mxu0 %v3385_v10  ;;  %2608 = vmatpush3.bf16.msra.mxu1 %v3485_v40 }
 0x539   :  { %2591 = vmatprep.subr.bf16.mxu0 %v3202_v0  ;;  %2609 = vmatprep.subr.bf16.mxu1 %v3202_v0 }
 0x53c   :  { %2592 = vmatpush3.bf16.msra.mxu0 %v3392_v11  ;;  %2610 = vmatpush3.bf16.msra.mxu1 %v3502_v44 }
 0x53d   :  { %2617 = vmatprep.subr.bf16.mxu0 %v3202_v0  ;;  %2611 = vmatprep.subr.bf16.mxu1 %v3202_v0 }
 0x53f   :  { %2594 = vmatmul.mubr.bf16.vlgmr.msra.gmra.mrb[24].mxu0 %v795_v61 }
 0x540   :  { %2618 = vmatpush3.bf16.msra.mxu0 %v3406_v14  ;;  %2612 = vmatpush3.bf16.msra.mxu1 %v3516_v46 }
 0x541   :  { %2619 = vmatprep.subr.bf16.mxu0 %v3202_v0  ;;  %2637 = vmatprep.subr.bf16.mxu1 %v3202_v0 }
 0x542   :  { %2633 = vmatprep.mubr.msk.bf16.mxu0 %vm3203_vm0, %v3202_v0 }
 0x544   :  { %2620 = vmatpush3.bf16.msra.mxu0 %v3415_v16 }
 0x545   :  { %2621 = vmatprep.subr.bf16.mxu0 %v3202_v0 }
 0x548   :  { %2622 = vmatpush3.bf16.msra.mxu0 %v3454_v32 }
 0x549   :  { %2623 = vmatprep.subr.bf16.mxu0 %v3202_v0 }
 0x54c   :  { %2624 = vmatpush3.bf16.msra.mxu0 %v3463_v36 }
 0x54d   :  { %2625 = vmatprep.subr.bf16.mxu0 %v3202_v0 }
 0x550   :  { %2626 = vmatpush3.bf16.msra.mxu0 %v3474_v38 }
 0x551   :  { %2627 = vmatprep.subr.bf16.mxu0 %v3202_v0 }
 0x554   :  { %2628 = vmatpush3.bf16.msra.mxu0 %v3491_v42 }
 0x555   :  { %2629 = vmatprep.subr.bf16.mxu0 %v3202_v0 }
 0x558   :  { %2630 = vmatpush3.bf16.msra.mxu0 %v3505_v45 }
 0x559   :  { %2631 = vmatprep.subr.bf16.mxu0 %v3202_v0 }
 0x55c   :  { %2632 = vmatpush3.bf16.msra.mxu0 %v3519_v47 }
 0x55d   :  { %2657 = vmatprep.subr.bf16.mxu0 %v3202_v0 }
 0x5f2   :  { %v830_v1 = vpop.f32.mrb[20].mxu0 }
 0x5f3   :  { %v2555_v2 = vpop.f32.mrb[21].mxu0  ;;  %v831_v25 = vadd.f32 %v3596_v6, %v830_v1 }
 0x5f4   :  { %v833_v3 = vpop.f32.mrb[22].mxu0 }
 0x5f5   :  { %v2556_v7 = vpop.f32.mrb[23].mxu0 }
 0x5f6   :  { %v871_v8 = vpop.f32.mrb[16].mxu1 }
 0x5f7   :  { %v2575_v9 = vpop.f32.mrb[17].mxu1  ;;  %v872_v19 = vadd.f32 %v3594_v5, %v871_v8 }
 0x5f8   :  { %v874_v52 = vpop.f32.mrb[18].mxu1 }
 0x5f9   :  { %v2576_v53 = vpop.f32.mrb[19].mxu1  ;;  %v877_v26 = vadd.f32 %v872_v19, %v831_v25 }
 0x5fb   :  { %v2099_v12 = vmul.f32 -1.442695, %v877_v26 }
 0x5fd   :  { %2990 = vpow2.f32 %v2099_v12 }
 0x607   :  { %v2991_v39 = vpop.eup %2990 }
 0x608   :  { %v881_v48 = vadd.f32 1.0, %v2991_v39 }
 0x612   :  { %v928_v27 = vpop.f32.mrb[24].mxu0 }
 0x613   :  { %v929_v30 = vadd.f32 %v3444_v23, %v928_v27  ;;  %v2595_v31 = vpop.f32.mrb[25].mxu0  ;;  %v3785_v27 = vld [vmem:[%s4274_s2 + $0x10] sm:$0xff]  }
 0x614   :  { %v931_v18 = vpop.f32.mrb[26].mxu0 }
 0x615   :  { %v934_v24 = vadd.f32 %v929_v30, %v195_v28  ;;  %v2596_v34 = vpop.f32.mrb[27].mxu0  ;;  %v200_v18 = vadd.f32 %v3439_v22, %v3588_v58 }
 0x617   :  { %v2100_v55 = vmul.f32 -1.442695, %v934_v24 }
 0x619   :  { %2992 = vpow2.f32 %v2100_v55 }
 0x623   :  { %v2993_v41 = vpop.eup %2992 }
 0x624   :  { %v938_v43 = vadd.f32 1.0, %v2993_v41 }
 0x626   :  { %2994 = vrcp.f32 %v938_v43 }
 0x627   :  { %2996 = vrcp.f32 %v881_v48 }
 0x630   :  { %v2995_v49 = vpop.eup %2994 }
 0x631   :  { %946 = vrot.lane.b32.xlu1 %v2995_v49, %s3205_s0  ;;  %941 = vrot.lane.b32.xlu0 %v2995_v49, %s3198_s15  ;;  %v2997_v20 = vpop.eup %2996 }
 0x635   :  { %889 = vrot.lane.b32.xlu1 %v2997_v20, %s3205_s0  ;;  %884 = vrot.lane.b32.xlu0 %v2997_v20, %s3198_s15 }
 0x6a3   :  { %v942_v50 = vpop.permute.xlu0 %941  ;;  %v947_v33 = vpop.permute.xlu1 %946 }
 0x6a4   :  { %v943_v51 = vmul.f32 %v942_v50, %v929_v30 }
 0x6a6   :  { %v944_v54 = vadd.f32 %v943_v51, %v195_v28 }
 0x6a7   :  { %v885_v62 = vpop.permute.xlu0 %884  ;;  %v890_v9 = vpop.permute.xlu1 %889 }
 0x6a8   :  { %2998 = vtanh.f32 %v944_v54  ;;  %v886_v63 = vmul.f32 %v885_v62, %v872_v19  ;;  %v3763_v19 = vld [vmem:[%s4274_s2] sm:$0xff]  }
 0x6aa   :  { %v887_v61 = vadd.f32 %v886_v63, %v831_v25  ;;  %v3774_v25 = vld [vmem:[%s4274_s2 + $0x8] sm:$0xff]  }
 0x6ac   :  { %3000 = vtanh.f32 %v887_v61 }
 0x6b2   :  { %v2999_v21 = vpop.eup %2998 }
 0x6b3   :  { %v948_v1 = vsub.f32 %v3680_v56, %v2999_v21 }
 0x6b5   :  { %v949_v2 = vmul.f32 %v948_v1, %v947_v33 }
 0x6b6   :  { %v3001_v3 = vpop.eup %3000 }
 0x6b7   :  { %v891_v7 = vsub.f32 %v3685_v4, %v3001_v3  ;;  %v3754_v8 = vadd.f32 %v2999_v21, %v949_v2 }
 0x6b9   :  { %v892_v52 = vmul.f32 %v891_v7, %v890_v9  ;;  %v951_v53 = vpack.c.bf16 %v3754_v8, %v3754_v8 }
 0x6bb   :  { %v3758_v26 = vadd.f32 %v3001_v3, %v892_v52  ;;  %2614 = vmatmul.mubr.bf16.vlgmr.msra.gmra.mrb[20].mxu1 %v951_v53 }
 0x6bc   :  { %2638 = vmatpush3.bf16.msra.mxu1 %v3763_v19  ;;  %2653 = vmatprep.mubr.msk.bf16.mxu1 %vm3203_vm0, %v3202_v0 }
 0x6bd   :  { %2639 = vmatprep.subr.bf16.mxu1 %v3202_v0  ;;  %v992_v56 = vpack.c.bf16 %v3758_v26, %v3758_v26 }
 0x6bf   :  { %2634 = vmatmul.mubr.bf16.vlgmr.msra.gmra.mrb[28].mxu0 %v992_v56 }
 0x6c0   :  { %2640 = vmatpush3.bf16.msra.mxu1 %v3774_v25  ;;  %2658 = vmatpush3.bf16.msra.mxu0 %v3404_v13  ;;  %v3794_v13 = vld [vmem:[%s4274_s2 + $0x18] sm:$0xff]  }
 0x6c1   :  { %2641 = vmatprep.subr.bf16.mxu1 %v3202_v0  ;;  %2659 = vmatprep.subr.bf16.mxu0 %v3202_v0 }
 0x6c2   :  { %2673 = vmatprep.mubr.msk.bf16.mxu0 %vm3203_vm0, %v3202_v0 }
 0x6c4   :  { %2642 = vmatpush3.bf16.msra.mxu1 %v3785_v27  ;;  %2660 = vmatpush3.bf16.msra.mxu0 %v3413_v15  ;;  %v3803_v15 = vld [vmem:[%s4274_s2 + $0x20] sm:$0xff]  }
 0x6c5   :  { %2643 = vmatprep.subr.bf16.mxu1 %v3202_v0  ;;  %2661 = vmatprep.subr.bf16.mxu0 %v3202_v0 }
 0x6c8   :  { %2644 = vmatpush3.bf16.msra.mxu1 %v3794_v13  ;;  %2662 = vmatpush3.bf16.msra.mxu0 %v3424_v17  ;;  %v3812_v17 = vld [vmem:[%s4274_s2 + $0x28] sm:$0xff]  }
 0x6c9   :  { %2645 = vmatprep.subr.bf16.mxu1 %v3202_v0  ;;  %2663 = vmatprep.subr.bf16.mxu0 %v3202_v0 }
 0x6cc   :  { %2646 = vmatpush3.bf16.msra.mxu1 %v3803_v15  ;;  %2664 = vmatpush3.bf16.msra.mxu0 %v3460_v35 }
 0x6cd   :  { %2647 = vmatprep.subr.bf16.mxu1 %v3202_v0  ;;  %2665 = vmatprep.subr.bf16.mxu0 %v3202_v0 }
 0x6d0   :  { %2648 = vmatpush3.bf16.msra.mxu1 %v3812_v17  ;;  %2666 = vmatpush3.bf16.msra.mxu0 %v3471_v37 }
 0x6d1   :  { %2649 = vmatprep.subr.bf16.mxu1 %v3202_v0  ;;  %2667 = vmatprep.subr.bf16.mxu0 %v3202_v0 }
 0x6d4   :  { %2650 = vmatpush3.bf16.msra.mxu1 %v3385_v10  ;;  %2668 = vmatpush3.bf16.msra.mxu0 %v3485_v40 }
 0x6d5   :  { %2651 = vmatprep.subr.bf16.mxu1 %v3202_v0  ;;  %2669 = vmatprep.subr.bf16.mxu0 %v3202_v0 }
 0x6d8   :  { %2652 = vmatpush3.bf16.msra.mxu1 %v3392_v11  ;;  %2670 = vmatpush3.bf16.msra.mxu0 %v3502_v44 }
 0x6d9   :  { %2677 = vmatprep.subr.bf16.mxu1 %v3202_v0  ;;  %2671 = vmatprep.subr.bf16.mxu0 %v3202_v0 }
 0x6db   :  { %2654 = vmatmul.mubr.bf16.vlgmr.msra.gmra.mrb[24].mxu1 %v951_v53 }
 0x6dc   :  { %2678 = vmatpush3.bf16.msra.mxu1 %v3406_v14  ;;  %2672 = vmatpush3.bf16.msra.mxu0 %v3516_v46 }
 0x6dd   :  { %2679 = vmatprep.subr.bf16.mxu1 %v3202_v0  ;;  %2697 = vmatprep.subr.bf16.mxu0 %v3202_v0 }
 0x6de   :  { %2693 = vmatprep.mubr.msk.bf16.mxu1 %vm3203_vm0, %v3202_v0 }
 0x6e0   :  { %2680 = vmatpush3.bf16.msra.mxu1 %v3415_v16 }
 0x6e1   :  { %2681 = vmatprep.subr.bf16.mxu1 %v3202_v0 }
 0x6e4   :  { %2682 = vmatpush3.bf16.msra.mxu1 %v3454_v32 }
 0x6e5   :  { %2683 = vmatprep.subr.bf16.mxu1 %v3202_v0 }
 0x6e8   :  { %2684 = vmatpush3.bf16.msra.mxu1 %v3463_v36 }
 0x6e9   :  { %2685 = vmatprep.subr.bf16.mxu1 %v3202_v0 }
 0x6ec   :  { %2686 = vmatpush3.bf16.msra.mxu1 %v3474_v38 }
 0x6ed   :  { %2687 = vmatprep.subr.bf16.mxu1 %v3202_v0 }
 0x6f0   :  { %2688 = vmatpush3.bf16.msra.mxu1 %v3491_v42 }
 0x6f1   :  { %2689 = vmatprep.subr.bf16.mxu1 %v3202_v0 }
 0x6f4   :  { %2690 = vmatpush3.bf16.msra.mxu1 %v3505_v45 }
 0x6f5   :  { %2691 = vmatprep.subr.bf16.mxu1 %v3202_v0 }
 0x6f8   :  { %2692 = vmatpush3.bf16.msra.mxu1 %v3519_v47 }
 0x6f9   :  { %2717 = vmatprep.subr.bf16.mxu1 %v3202_v0 }
 0x78e   :  { %v986_v10 = vpop.f32.mrb[20].mxu1 }
 0x78f   :  { %v2615_v11 = vpop.f32.mrb[21].mxu1  ;;  %v987_v30 = vadd.f32 %v3596_v6, %v986_v10 }
 0x790   :  { %v989_v14 = vpop.f32.mrb[22].mxu1 }
 0x791   :  { %v2616_v16 = vpop.f32.mrb[23].mxu1  ;;  %v3873_v14 = vld [vmem:[%s4277_s5] sm:$0xff]  }
 0x792   :  { %v1027_v32 = vpop.f32.mrb[28].mxu0  ;;  %v3884_v16 = vld [vmem:[%s4277_s5 + $0x8] sm:$0xff]  }
 0x793   :  { %v2635_v36 = vpop.f32.mrb[29].mxu0  ;;  %v1028_v42 = vadd.f32 %v3594_v5, %v1027_v32  ;;  %v3893_v32 = vld [vmem:[%s4277_s5 + $0x10] sm:$0xff]  }
 0x794   :  { %v1030_v38 = vpop.f32.mrb[30].mxu0  ;;  %v3909_v36 = vld [vmem:[%s4274_s2 + $0x30] sm:$0xff]  }
 0x795   :  { %v2636_v28 = vpop.f32.mrb[31].mxu0  ;;  %v1033_v31 = vadd.f32 %v1028_v42, %v987_v30  ;;  %v3944_v38 = vld [vmem:[#allocation4 + $0x20] sm:$0xff]  }
 0x796   :  { %v3948_v28 = vld [vmem:[#allocation4 + $0x28] sm:$0xff]  }
 0x797   :  { %v2101_v55 = vmul.f32 -1.442695, %v1033_v31 }
 0x799   :  { %3002 = vpow2.f32 %v2101_v55 }
 0x7a3   :  { %v3003_v49 = vpop.eup %3002 }
 0x7a4   :  { %v1037_v51 = vadd.f32 1.0, %v3003_v49  ;;  %v3968_v49 = vld [vmem:[%s4276_s4] ss:$0 sm:$0xff] }
 0x7ae   :  { %v1084_v12 = vpop.f32.mrb[24].mxu1 }
 0x7af   :  { %v1085_v24 = vadd.f32 %v3444_v23, %v1084_v12  ;;  %v2655_v34 = vpop.f32.mrb[25].mxu1 }
 0x7b0   :  { %v1087_v39 = vpop.f32.mrb[26].mxu1 }
 0x7b1   :  { %v1090_v41 = vadd.f32 %v1085_v24, %v200_v18  ;;  %v2656_v43 = vpop.f32.mrb[27].mxu1 }
 0x7b3   :  { %v2102_v48 = vmul.f32 -1.442695, %v1090_v41 }
 0x7b5   :  { %3004 = vpow2.f32 %v2102_v48 }
 0x7bf   :  { %v3005_v20 = vpop.eup %3004 }
 0x7c0   :  { %v1094_v50 = vadd.f32 1.0, %v3005_v20 }
 0x7c2   :  { %3006 = vrcp.f32 %v1094_v50 }
 0x7c3   :  { %3008 = vrcp.f32 %v1037_v51 }
 0x7cc   :  { %v3007_v54 = vpop.eup %3006 }
 0x7cd   :  { %1102 = vrot.lane.b32.xlu1 %v3007_v54, %s3205_s0  ;;  %1097 = vrot.lane.b32.xlu0 %v3007_v54, %s3198_s15  ;;  %v3009_v22 = vpop.eup %3008 }
 0x7d1   :  { %1045 = vrot.lane.b32.xlu1 %v3009_v22, %s3205_s0  ;;  %1040 = vrot.lane.b32.xlu0 %v3009_v22, %s3198_s15 }
 0x83f   :  { %v1098_v23 = vpop.permute.xlu0 %1097  ;;  %v1103_v1 = vpop.permute.xlu1 %1102 }
 0x840   :  { %v1099_v58 = vmul.f32 %v1098_v23, %v1085_v24 }
 0x842   :  { %v1100_v62 = vadd.f32 %v1099_v58, %v200_v18 }
 0x843   :  { %v1041_v63 = vpop.permute.xlu0 %1040  ;;  %v1046_v53 = vpop.permute.xlu1 %1045 }
 0x844   :  { %3010 = vtanh.f32 %v1100_v62  ;;  %v1042_v61 = vmul.f32 %v1041_v63, %v1028_v42 }
 0x846   :  { %v1043_v21 = vadd.f32 %v1042_v61, %v987_v30 }
 0x848   :  { %3012 = vtanh.f32 %v1043_v21 }
 0x84e   :  { %v3011_v33 = vpop.eup %3010 }
 0x84f   :  { %v1104_v2 = vsub.f32 %v3754_v8, %v3011_v33 }
 0x851   :  { %v1105_v3 = vmul.f32 %v1104_v2, %v1103_v1 }
 0x852   :  { %v3013_v7 = vpop.eup %3012 }
 0x853   :  { %v1047_v9 = vsub.f32 %v3758_v26, %v3013_v7  ;;  %v3857_v52 = vadd.f32 %v3011_v33, %v1105_v3 }
 0x855   :  { %v1048_v56 = vmul.f32 %v1047_v9, %v1046_v53  ;;  %v1107_v10 = vpack.c.bf16 %v3857_v52, %v3857_v52 }
 0x857   :  { %v3861_v11 = vadd.f32 %v3013_v7, %v1048_v56  ;;  %2674 = vmatmul.mubr.bf16.vlgmr.msra.gmra.mrb[32].mxu0 %v1107_v10 }
 0x858   :  { %2698 = vmatpush3.bf16.msra.mxu0 %v3763_v19  ;;  %2713 = vmatprep.mubr.msk.bf16.mxu0 %vm3203_vm0, %v3202_v0 }
 0x859   :  { %2699 = vmatprep.subr.bf16.mxu0 %v3202_v0  ;;  %v1148_v8 = vpack.c.bf16 %v3861_v11, %v3861_v11 }
 0x85b   :  { %2694 = vmatmul.mubr.bf16.vlgmr.msra.gmra.mrb[28].mxu1 %v1148_v8 }
 0x85c   :  { %2700 = vmatpush3.bf16.msra.mxu0 %v3774_v25  ;;  %2718 = vmatpush3.bf16.msra.mxu1 %v3873_v14 }
 0x85d   :  { %2701 = vmatprep.subr.bf16.mxu0 %v3202_v0  ;;  %2719 = vmatprep.subr.bf16.mxu1 %v3202_v0 }
 0x85e   :  { %2733 = vmatprep.mubr.msk.bf16.mxu1 %vm3203_vm0, %v3202_v0 }
 0x860   :  { %2702 = vmatpush3.bf16.msra.mxu0 %v3785_v27  ;;  %2720 = vmatpush3.bf16.msra.mxu1 %v3884_v16 }
 0x861   :  { %2703 = vmatprep.subr.bf16.mxu0 %v3202_v0  ;;  %2721 = vmatprep.subr.bf16.mxu1 %v3202_v0 }
 0x864   :  { %2704 = vmatpush3.bf16.msra.mxu0 %v3794_v13  ;;  %2722 = vmatpush3.bf16.msra.mxu1 %v3893_v32 }
 0x865   :  { %2705 = vmatprep.subr.bf16.mxu0 %v3202_v0  ;;  %2723 = vmatprep.subr.bf16.mxu1 %v3202_v0 }
 0x868   :  { %2706 = vmatpush3.bf16.msra.mxu0 %v3803_v15  ;;  %2724 = vmatpush3.bf16.msra.mxu1 %v3460_v35  ;;  %v3918_v35 = vld [vmem:[%s4274_s2 + $0x38] sm:$0xff]  }
 0x869   :  { %2707 = vmatprep.subr.bf16.mxu0 %v3202_v0  ;;  %2725 = vmatprep.subr.bf16.mxu1 %v3202_v0 }
 0x86c   :  { %2708 = vmatpush3.bf16.msra.mxu0 %v3812_v17  ;;  %2726 = vmatpush3.bf16.msra.mxu1 %v3471_v37  ;;  %v3924_v37 = vld [vmem:[#allocation4] sm:$0xff]  }
 0x86d   :  { %2709 = vmatprep.subr.bf16.mxu0 %v3202_v0  ;;  %2727 = vmatprep.subr.bf16.mxu1 %v3202_v0 }
 0x870   :  { %2710 = vmatpush3.bf16.msra.mxu0 %v3909_v36  ;;  %2728 = vmatpush3.bf16.msra.mxu1 %v3485_v40  ;;  %v3932_v40 = vld [vmem:[#allocation4 + $0x8] sm:$0xff]  }
 0x871   :  { %2711 = vmatprep.subr.bf16.mxu0 %v3202_v0  ;;  %2729 = vmatprep.subr.bf16.mxu1 %v3202_v0 }
 0x874   :  { %2712 = vmatpush3.bf16.msra.mxu0 %v3918_v35  ;;  %2730 = vmatpush3.bf16.msra.mxu1 %v3502_v44  ;;  %v3936_v44 = vld [vmem:[#allocation4 + $0x10] sm:$0xff]  }
 0x875   :  { %2737 = vmatprep.subr.bf16.mxu0 %v3202_v0  ;;  %2731 = vmatprep.subr.bf16.mxu1 %v3202_v0 }
 0x877   :  { %2714 = vmatmul.mubr.bf16.vlgmr.msra.gmra.mrb[36].mxu0 %v1107_v10 }
 0x878   :  { %2738 = vmatpush3.bf16.msra.mxu0 %v3924_v37  ;;  %2732 = vmatpush3.bf16.msra.mxu1 %v3516_v46  ;;  %v3940_v46 = vld [vmem:[#allocation4 + $0x18] sm:$0xff]  }
 0x879   :  { %2739 = vmatprep.subr.bf16.mxu0 %v3202_v0  ;;  %2757 = vmatprep.subr.bf16.mxu1 %v3202_v0 }
 0x87a   :  { %2753 = vmatprep.mubr.msk.bf16.mxu0 %vm3203_vm0, %v3202_v0 }
 0x87c   :  { %2740 = vmatpush3.bf16.msra.mxu0 %v3932_v40 }
 0x87d   :  { %2741 = vmatprep.subr.bf16.mxu0 %v3202_v0 }
 0x880   :  { %2742 = vmatpush3.bf16.msra.mxu0 %v3936_v44 }
 0x881   :  { %2743 = vmatprep.subr.bf16.mxu0 %v3202_v0 }
 0x884   :  { %2744 = vmatpush3.bf16.msra.mxu0 %v3940_v46 }
 0x885   :  { %2745 = vmatprep.subr.bf16.mxu0 %v3202_v0 }
 0x888   :  { %2746 = vmatpush3.bf16.msra.mxu0 %v3944_v38 }
 0x889   :  { %2747 = vmatprep.subr.bf16.mxu0 %v3202_v0 }
 0x88c   :  { %2748 = vmatpush3.bf16.msra.mxu0 %v3948_v28 }
 0x88d   :  { %2749 = vmatprep.subr.bf16.mxu0 %v3202_v0 }
 0x890   :  { %2750 = vmatpush3.bf16.msra.mxu0 %v3505_v45 }
 0x891   :  { %2751 = vmatprep.subr.bf16.mxu0 %v3202_v0 }
 0x894   :  { %2752 = vmatpush3.bf16.msra.mxu0 %v3519_v47  ;;  %v3961_v47 = vld [vmem:[%s4275_s3] ss:$0 sm:$0xff] }
 0x895   :  { %2777 = vmatprep.subr.bf16.mxu0 %v3202_v0  ;;  %v203_v48 = vadd.f32 %v3961_v47, %v3592_v60 }
 0x92a   :  { %v1142_v42 = vpop.f32.mrb[32].mxu0 }
 0x92b   :  { %v2675_v30 = vpop.f32.mrb[33].mxu0  ;;  %v1143_v41 = vadd.f32 %v3596_v6, %v1142_v42 }
 0x92c   :  { %v1145_v31 = vpop.f32.mrb[34].mxu0 }
 0x92d   :  { %v2676_v12 = vpop.f32.mrb[35].mxu0 }
 0x92e   :  { %v1183_v18 = vpop.f32.mrb[28].mxu1 }
 0x92f   :  { %v2695_v24 = vpop.f32.mrb[29].mxu1  ;;  %v1184_v39 = vadd.f32 %v3594_v5, %v1183_v18 }
 0x930   :  { %v1186_v34 = vpop.f32.mrb[30].mxu1 }
 0x931   :  { %v2696_v55 = vpop.f32.mrb[31].mxu1  ;;  %v1189_v43 = vadd.f32 %v1184_v39, %v1143_v41  ;;  %v4007_v34 = vld [vmem:[%s4277_s5 + $0x18] sm:$0xff]  }
 0x932   :  { %v4016_v55 = vld [vmem:[%s4277_s5 + $0x20] sm:$0xff]  }
 0x933   :  { %v2103_v50 = vmul.f32 -1.442695, %v1189_v43  ;;  %v4043_v43 = vld [vmem:[%s4277_s5 + $0x38] sm:$0xff]  }
 0x935   :  { %3014 = vpow2.f32 %v2103_v50 }
 0x93f   :  { %v3015_v23 = vpop.eup %3014 }
 0x940   :  { %v1193_v63 = vadd.f32 1.0, %v3015_v23 }
 0x94a   :  { %v1240_v45 = vpop.f32.mrb[36].mxu0 }
 0x94b   :  { %v1241_v20 = vadd.f32 %v3968_v49, %v1240_v45  ;;  %v2715_v5 = vpop.f32.mrb[37].mxu0  ;;  %v4060_v45 = vld [vmem:[#allocation4 + $0x30] sm:$0xff]  }
 0x94c   :  { %v1243_v6 = vpop.f32.mrb[38].mxu0 }
 0x94d   :  { %v1246_v51 = vadd.f32 %v1241_v20, %v203_v48  ;;  %v2716_v54 = vpop.f32.mrb[39].mxu0 }
 0x94f   :  { %v2104_v22 = vmul.f32 -1.442695, %v1246_v51 }
 0x951   :  { %3016 = vpow2.f32 %v2104_v22 }
 0x95b   :  { %v3017_v58 = vpop.eup %3016 }
 0x95c   :  { %v1250_v62 = vadd.f32 1.0, %v3017_v58  ;;  %v4068_v58 = vld [vmem:[#allocation7] ss:$0 sm:$0xff] }
 0x95e   :  { %3018 = vrcp.f32 %v1250_v62 }
 0x95f   :  { %3020 = vrcp.f32 %v1193_v63  ;;  %v4071_v63 = vld [vmem:[#allocation6] ss:$0 sm:$0xff] }
 0x968   :  { %v3019_v60 = vpop.eup %3018 }
 0x969   :  { %1258 = vrot.lane.b32.xlu1 %v3019_v60, %s3205_s0  ;;  %1253 = vrot.lane.b32.xlu0 %v3019_v60, %s3198_s15  ;;  %v3021_v61 = vpop.eup %3020 }
 0x96d   :  { %1201 = vrot.lane.b32.xlu1 %v3021_v61, %s3205_s0  ;;  %1196 = vrot.lane.b32.xlu0 %v3021_v61, %s3198_s15 }
 0x9db   :  { %v1254_v21 = vpop.permute.xlu0 %1253  ;;  %v1259_v53 = vpop.permute.xlu1 %1258 }
 0x9dc   :  { %v1255_v33 = vmul.f32 %v1254_v21, %v1241_v20 }
 0x9de   :  { %v1256_v1 = vadd.f32 %v1255_v33, %v203_v48  ;;  %v4064_v48 = vld [vmem:[#allocation4 + $0x38] sm:$0xff]   ;;  %v208_v33 = vadd.f32 %v3961_v47, %v3586_v57 }
 0x9df   :  { %v1197_v2 = vpop.permute.xlu0 %1196  ;;  %v1202_v31 = vpop.permute.xlu1 %1201 }
 0x9e0   :  { %3022 = vtanh.f32 %v1256_v1  ;;  %v1198_v3 = vmul.f32 %v1197_v2, %v1184_v39  ;;  %v4025_v39 = vld [vmem:[%s4277_s5 + $0x28] sm:$0xff]  }
 0x9e2   :  { %v1199_v7 = vadd.f32 %v1198_v3, %v1143_v41  ;;  %v4034_v41 = vld [vmem:[%s4277_s5 + $0x30] sm:$0xff]  }
 0x9e4   :  { %3024 = vtanh.f32 %v1199_v7 }
 0x9ea   :  { %v3023_v9 = vpop.eup %3022 }
 0x9eb   :  { %v1260_v56 = vsub.f32 %v3857_v52, %v3023_v9 }
 0x9ed   :  { %v1261_v10 = vmul.f32 %v1260_v56, %v1259_v53 }
 0x9ee   :  { %v3025_v8 = vpop.eup %3024 }
 0x9ef   :  { %v1203_v42 = vsub.f32 %v3861_v11, %v3025_v8  ;;  %v3977_v30 = vadd.f32 %v3023_v9, %v1261_v10 }
 0x9f1   :  { %v1204_v12 = vmul.f32 %v1203_v42, %v1202_v31  ;;  %v1263_v18 = vpack.c.bf16 %v3977_v30, %v3977_v30 }
 0x9f3   :  { %v3981_v24 = vadd.f32 %v3025_v8, %v1204_v12  ;;  %2734 = vmatmul.mubr.bf16.vlgmr.msra.gmra.mrb[32].mxu1 %v1263_v18 }
 0x9f4   :  { %2758 = vmatpush3.bf16.msra.mxu1 %v3763_v19  ;;  %2773 = vmatprep.mubr.msk.bf16.mxu1 %vm3203_vm0, %v3202_v0 }
 0x9f5   :  { %2759 = vmatprep.subr.bf16.mxu1 %v3202_v0  ;;  %v1304_v52 = vpack.c.bf16 %v3981_v24, %v3981_v24 }
 0x9f7   :  { %2754 = vmatmul.mubr.bf16.vlgmr.msra.gmra.mrb[40].mxu0 %v1304_v52 }
 0x9f8   :  { %2760 = vmatpush3.bf16.msra.mxu1 %v3774_v25  ;;  %2778 = vmatpush3.bf16.msra.mxu0 %v3873_v14 }
 0x9f9   :  { %2761 = vmatprep.subr.bf16.mxu1 %v3202_v0  ;;  %2779 = vmatprep.subr.bf16.mxu0 %v3202_v0 }
 0x9fa   :  { %2793 = vmatprep.mubr.msk.bf16.mxu0 %vm3203_vm0, %v3202_v0 }
 0x9fc   :  { %2762 = vmatpush3.bf16.msra.mxu1 %v3785_v27  ;;  %2780 = vmatpush3.bf16.msra.mxu0 %v3884_v16 }
 0x9fd   :  { %2763 = vmatprep.subr.bf16.mxu1 %v3202_v0  ;;  %2781 = vmatprep.subr.bf16.mxu0 %v3202_v0 }
 0xa00   :  { %2764 = vmatpush3.bf16.msra.mxu1 %v3794_v13  ;;  %2782 = vmatpush3.bf16.msra.mxu0 %v3893_v32 }
 0xa01   :  { %2765 = vmatprep.subr.bf16.mxu1 %v3202_v0  ;;  %2783 = vmatprep.subr.bf16.mxu0 %v3202_v0 }
 0xa04   :  { %2766 = vmatpush3.bf16.msra.mxu1 %v3803_v15  ;;  %2784 = vmatpush3.bf16.msra.mxu0 %v4007_v34 }
 0xa05   :  { %2767 = vmatprep.subr.bf16.mxu1 %v3202_v0  ;;  %2785 = vmatprep.subr.bf16.mxu0 %v3202_v0 }
 0xa08   :  { %2768 = vmatpush3.bf16.msra.mxu1 %v3812_v17  ;;  %2786 = vmatpush3.bf16.msra.mxu0 %v4016_v55 }
 0xa09   :  { %2769 = vmatprep.subr.bf16.mxu1 %v3202_v0  ;;  %2787 = vmatprep.subr.bf16.mxu0 %v3202_v0 }
 0xa0c   :  { %2770 = vmatpush3.bf16.msra.mxu1 %v3909_v36  ;;  %2788 = vmatpush3.bf16.msra.mxu0 %v4025_v39 }
 0xa0d   :  { %2771 = vmatprep.subr.bf16.mxu1 %v3202_v0  ;;  %2789 = vmatprep.subr.bf16.mxu0 %v3202_v0 }
 0xa10   :  { %2772 = vmatpush3.bf16.msra.mxu1 %v3918_v35  ;;  %2790 = vmatpush3.bf16.msra.mxu0 %v4034_v41 }
 0xa11   :  { %2797 = vmatprep.subr.bf16.mxu1 %v3202_v0  ;;  %2791 = vmatprep.subr.bf16.mxu0 %v3202_v0 }
 0xa13   :  { %2774 = vmatmul.mubr.bf16.vlgmr.msra.gmra.mrb[36].mxu1 %v1263_v18 }
 0xa14   :  { %2798 = vmatpush3.bf16.msra.mxu1 %v3924_v37  ;;  %2792 = vmatpush3.bf16.msra.mxu0 %v4043_v43 }
 0xa15   :  { %2799 = vmatprep.subr.bf16.mxu1 %v3202_v0  ;;  %2817 = vmatprep.subr.bf16.mxu0 %v3202_v0 }
 0xa16   :  { %2813 = vmatprep.mubr.msk.bf16.mxu1 %vm3203_vm0, %v3202_v0 }
 0xa18   :  { %2800 = vmatpush3.bf16.msra.mxu1 %v3932_v40 }
 0xa19   :  { %2801 = vmatprep.subr.bf16.mxu1 %v3202_v0 }
 0xa1c   :  { %2802 = vmatpush3.bf16.msra.mxu1 %v3936_v44 }
 0xa1d   :  { %2803 = vmatprep.subr.bf16.mxu1 %v3202_v0 }
 0xa20   :  { %2804 = vmatpush3.bf16.msra.mxu1 %v3940_v46 }
 0xa21   :  { %2805 = vmatprep.subr.bf16.mxu1 %v3202_v0 }
 0xa24   :  { %2806 = vmatpush3.bf16.msra.mxu1 %v3944_v38 }
 0xa25   :  { %2807 = vmatprep.subr.bf16.mxu1 %v3202_v0 }
 0xa28   :  { %2808 = vmatpush3.bf16.msra.mxu1 %v3948_v28 }
 0xa29   :  { %2809 = vmatprep.subr.bf16.mxu1 %v3202_v0 }
 0xa2c   :  { %2810 = vmatpush3.bf16.msra.mxu1 %v4060_v45 }
 0xa2d   :  { %2811 = vmatprep.subr.bf16.mxu1 %v3202_v0 }
 0xa30   :  { %2812 = vmatpush3.bf16.msra.mxu1 %v4064_v48 }
 0xa31   :  { %2837 = vmatprep.subr.bf16.mxu1 %v3202_v0 }
 0xac6   :  { %v1298_v20 = vpop.f32.mrb[32].mxu1 }
 0xac7   :  { %v2735_v5 = vpop.f32.mrb[33].mxu1  ;;  %v1299_v60 = vadd.f32 %v4071_v63, %v1298_v20 }
 0xac8   :  { %v1301_v50 = vpop.f32.mrb[34].mxu1 }
 0xac9   :  { %v2736_v6 = vpop.f32.mrb[35].mxu1 }
 0xaca   :  { %v1339_v51 = vpop.f32.mrb[40].mxu0 }
 0xacb   :  { %v2755_v54 = vpop.f32.mrb[41].mxu0  ;;  %v1340_v62 = vadd.f32 %v4068_v58, %v1339_v51 }
 0xacc   :  { %v1342_v22 = vpop.f32.mrb[42].mxu0 }
 0xacd   :  { %v2756_v23 = vpop.f32.mrb[43].mxu0  ;;  %v1345_v61 = vadd.f32 %v1340_v62, %v1299_v60 }
 0xacf   :  { %v2105_v3 = vmul.f32 -1.442695, %v1345_v61 }
 0xad1   :  { %3026 = vpow2.f32 %v2105_v3 }
 0xadb   :  { %v3027_v10 = vpop.eup %3026 }
 0xadc   :  { %v1349_v31 = vadd.f32 1.0, %v3027_v10 }
 0xae6   :  { %v1396_v21 = vpop.f32.mrb[36].mxu1 }
 0xae7   :  { %v1397_v1 = vadd.f32 %v3968_v49, %v1396_v21  ;;  %v2775_v2 = vpop.f32.mrb[37].mxu1 }
 0xae8   :  { %v1399_v7 = vpop.f32.mrb[38].mxu1 }
 0xae9   :  { %v1402_v9 = vadd.f32 %v1397_v1, %v208_v33  ;;  %v2776_v53 = vpop.f32.mrb[39].mxu1 }
 0xaeb   :  { %v2106_v56 = vmul.f32 -1.442695, %v1402_v9 }
 0xaed   :  { %3028 = vpow2.f32 %v2106_v56 }
 0xaf7   :  { %v3029_v8 = vpop.eup %3028 }
 0xaf8   :  { %v1406_v42 = vadd.f32 1.0, %v3029_v8 }
 0xafa   :  { %3030 = vrcp.f32 %v1406_v42 }
 0xafb   :  { %3032 = vrcp.f32 %v1349_v31 }
 0xb04   :  { %v3031_v12 = vpop.eup %3030 }
 0xb05   :  { %1414 = vrot.lane.b32.xlu1 %v3031_v12, %s3205_s0  ;;  %1409 = vrot.lane.b32.xlu0 %v3031_v12, %s3198_s15  ;;  %v3033_v57 = vpop.eup %3032 }
 0xb09   :  { %1357 = vrot.lane.b32.xlu1 %v3033_v57, %s3205_s0  ;;  %1352 = vrot.lane.b32.xlu0 %v3033_v57, %s3198_s15 }
 0xb77   :  { %v1410_v18 = vpop.permute.xlu0 %1409  ;;  %v1415_v54 = vpop.permute.xlu1 %1414 }
 0xb78   :  { %v1411_v52 = vmul.f32 %v1410_v18, %v1397_v1 }
 0xb7a   :  { %v1412_v20 = vadd.f32 %v1411_v52, %v208_v33 }
 0xb7b   :  { %v1353_v5 = vpop.permute.xlu0 %1352  ;;  %v1358_v3 = vpop.permute.xlu1 %1357 }
 0xb7c   :  { %3034 = vtanh.f32 %v1412_v20  ;;  %v1354_v50 = vmul.f32 %v1353_v5, %v1340_v62 }
 0xb7e   :  { %v1355_v6 = vadd.f32 %v1354_v50, %v1299_v60 }
 0xb80   :  { %3036 = vtanh.f32 %v1355_v6 }
 0xb86   :  { %v3035_v51 = vpop.eup %3034 }
 0xb87   :  { %v1416_v22 = vsub.f32 %v3977_v30, %v3035_v51 }
 0xb89   :  { %v1417_v23 = vmul.f32 %v1416_v22, %v1415_v54 }
 0xb8a   :  { %v3037_v61 = vpop.eup %3036 }
 0xb8b   :  { %v1359_v21 = vsub.f32 %v3981_v24, %v3037_v61  ;;  %v4083_v2 = vadd.f32 %v3035_v51, %v1417_v23 }
 0xb8d   :  { %v1360_v7 = vmul.f32 %v1359_v21, %v1358_v3  ;;  %v1419_v33 = vpack.c.bf16 %v4083_v2, %v4083_v2 }
 0xb8f   :  { %v4087_v1 = vadd.f32 %v3037_v61, %v1360_v7  ;;  %2794 = vmatmul.mubr.bf16.vlgmr.msra.gmra.mrb[44].mxu0 %v1419_v33 }
 0xb90   :  { %2818 = vmatpush3.bf16.msra.mxu0 %v3763_v19  ;;  %2833 = vmatprep.mubr.msk.bf16.mxu0 %vm3203_vm0, %v3202_v0 }
 0xb91   :  { %2819 = vmatprep.subr.bf16.mxu0 %v3202_v0  ;;  %v1460_v30 = vpack.c.bf16 %v4087_v1, %v4087_v1 }
 0xb93   :  { %2814 = vmatmul.mubr.bf16.vlgmr.msra.gmra.mrb[40].mxu1 %v1460_v30 }
 0xb94   :  { %2820 = vmatpush3.bf16.msra.mxu0 %v3774_v25  ;;  %2838 = vmatpush3.bf16.msra.mxu1 %v3873_v14 }
 0xb95   :  { %2821 = vmatprep.subr.bf16.mxu0 %v3202_v0  ;;  %2839 = vmatprep.subr.bf16.mxu1 %v3202_v0 }
 0xb96   :  { %2853 = vmatprep.mubr.msk.bf16.mxu1 %vm3203_vm0, %v3202_v0 }
 0xb98   :  { %2822 = vmatpush3.bf16.msra.mxu0 %v3785_v27  ;;  %2840 = vmatpush3.bf16.msra.mxu1 %v3884_v16 }
 0xb99   :  { %2823 = vmatprep.subr.bf16.mxu0 %v3202_v0  ;;  %2841 = vmatprep.subr.bf16.mxu1 %v3202_v0 }
 0xb9c   :  { %2824 = vmatpush3.bf16.msra.mxu0 %v3794_v13  ;;  %2842 = vmatpush3.bf16.msra.mxu1 %v3893_v32 }
 0xb9d   :  { %2825 = vmatprep.subr.bf16.mxu0 %v3202_v0  ;;  %2843 = vmatprep.subr.bf16.mxu1 %v3202_v0 }
 0xba0   :  { %2826 = vmatpush3.bf16.msra.mxu0 %v3803_v15  ;;  %2844 = vmatpush3.bf16.msra.mxu1 %v4007_v34 }
 0xba1   :  { %2827 = vmatprep.subr.bf16.mxu0 %v3202_v0  ;;  %2845 = vmatprep.subr.bf16.mxu1 %v3202_v0 }
 0xba4   :  { %2828 = vmatpush3.bf16.msra.mxu0 %v3812_v17  ;;  %2846 = vmatpush3.bf16.msra.mxu1 %v4016_v55 }
 0xba5   :  { %2829 = vmatprep.subr.bf16.mxu0 %v3202_v0  ;;  %2847 = vmatprep.subr.bf16.mxu1 %v3202_v0 }
 0xba8   :  { %2830 = vmatpush3.bf16.msra.mxu0 %v3909_v36  ;;  %2848 = vmatpush3.bf16.msra.mxu1 %v4025_v39 }
 0xba9   :  { %2831 = vmatprep.subr.bf16.mxu0 %v3202_v0  ;;  %2849 = vmatprep.subr.bf16.mxu1 %v3202_v0 }
 0xbac   :  { %2832 = vmatpush3.bf16.msra.mxu0 %v3918_v35  ;;  %2850 = vmatpush3.bf16.msra.mxu1 %v4034_v41 }
 0xbad   :  { %2857 = vmatprep.subr.bf16.mxu0 %v3202_v0  ;;  %2851 = vmatprep.subr.bf16.mxu1 %v3202_v0 }
 0xbaf   :  { %2834 = vmatmul.mubr.bf16.vlgmr.msra.gmra.mrb[48].mxu0 %v1419_v33 }
 0xbb0   :  { %2858 = vmatpush3.bf16.msra.mxu0 %v3924_v37  ;;  %2873 = vmatprep.mubr.msk.bf16.mxu0 %vm3203_vm0, %v3202_v0 }
 0xbb1   :  { %2859 = vmatprep.subr.bf16.mxu0 %v3202_v0  ;;  %2852 = vmatpush3.bf16.msra.mxu1 %v4043_v43 }
 0xbb4   :  { %2860 = vmatpush3.bf16.msra.mxu0 %v3932_v40 }
 0xbb5   :  { %2861 = vmatprep.subr.bf16.mxu0 %v3202_v0 }
 0xbb8   :  { %2862 = vmatpush3.bf16.msra.mxu0 %v3936_v44 }
 0xbb9   :  { %2863 = vmatprep.subr.bf16.mxu0 %v3202_v0 }
 0xbbc   :  { %2864 = vmatpush3.bf16.msra.mxu0 %v3940_v46 }
 0xbbd   :  { %2865 = vmatprep.subr.bf16.mxu0 %v3202_v0 }
 0xbc0   :  { %2866 = vmatpush3.bf16.msra.mxu0 %v3944_v38  ;;  %v211_v38 = vadd.f32 %v3961_v47, %v3590_v59 }
 0xbc1   :  { %2867 = vmatprep.subr.bf16.mxu0 %v3202_v0 }
 0xbc4   :  { %2868 = vmatpush3.bf16.msra.mxu0 %v3948_v28 }
 0xbc5   :  { %2869 = vmatprep.subr.bf16.mxu0 %v3202_v0 }
 0xbc8   :  { %2870 = vmatpush3.bf16.msra.mxu0 %v4060_v45 }
 0xbc9   :  { %2871 = vmatprep.subr.bf16.mxu0 %v3202_v0 }
 0xbcc   :  { %2872 = vmatpush3.bf16.msra.mxu0 %v4064_v48 }
 0xbcd   :  { %2877 = vmatprep.subr.bf16.mxu0 %v3202_v0 }
 0xc62   :  { %v1454_v19 = vpop.f32.mrb[44].mxu0 }
 0xc63   :  { %v2795_v25 = vpop.f32.mrb[45].mxu0  ;;  %v1455_v17 = vadd.f32 %v4071_v63, %v1454_v19 }
 0xc64   :  { %v1457_v27 = vpop.f32.mrb[46].mxu0 }
 0xc65   :  { %v2796_v13 = vpop.f32.mrb[47].mxu0 }
 0xc66   :  { %v1495_v15 = vpop.f32.mrb[40].mxu1 }
 0xc67   :  { %v1496_v14 = vadd.f32 %v4068_v58, %v1495_v15  ;;  %v2815_v16 = vpop.f32.mrb[41].mxu1 }
 0xc68   :  { %v1498_v32 = vpop.f32.mrb[42].mxu1 }
 0xc69   :  { %v1501_v36 = vadd.f32 %v1496_v14, %v1455_v17  ;;  %v2816_v35 = vpop.f32.mrb[43].mxu1 }
 0xc6b   :  { %v2107_v37 = vmul.f32 -1.442695, %v1501_v36 }
 0xc6d   :  { %3038 = vpow2.f32 %v2107_v37 }
 0xc77   :  { %v3039_v40 = vpop.eup %3038 }
 0xc78   :  { %v1505_v44 = vadd.f32 1.0, %v3039_v40 }
 0xc7a   :  { %3040 = vrcp.f32 %v1505_v44 }
 0xc82   :  { %v1552_v46 = vpop.f32.mrb[48].mxu0 }
 0xc83   :  { %v1553_v28 = vadd.f32 %v3968_v49, %v1552_v46  ;;  %v2835_v34 = vpop.f32.mrb[49].mxu0 }
 0xc84   :  { %v3041_v55 = vpop.eup %3040  ;;  %v1555_v39 = vpop.f32.mrb[50].mxu0 }
 0xc85   :  { %v1558_v41 = vadd.f32 %v1553_v28, %v211_v38  ;;  %v2836_v43 = vpop.f32.mrb[51].mxu0  ;;  %1508 = vrot.lane.b32.xlu0 %v3041_v55, %s3198_s15 }
 0xc87   :  { %v2108_v45 = vmul.f32 -1.442695, %v1558_v41 }
 0xc89   :  { %3042 = vpow2.f32 %v2108_v45  ;;  %1513 = vrot.lane.b32.xlu0 %v3041_v55, %s3205_s0  ;;  %v2936_v45 = vld [vmem:[%s4281_s9 + $0x40] sm:$0xff]  }
 0xc8a   :  { %2356 = vmatprep.subr.bf16.mxu1 %v2936_v45 }
 0xc93   :  { %v3043_v48 = vpop.eup %3042 }
 0xc94   :  { %v1562_v62 = vadd.f32 1.0, %v3043_v48  ;;  %v2937_v48 = vld [vmem:[%s4281_s9] sm:$0xff]  }
 0xc96   :  { %3044 = vrcp.f32 %v1562_v62  ;;  %v2938_v62 = vld [vmem:[%s4281_s9 + $0x48] sm:$0xff]  }
 0xca0   :  { %v3045_v60 = vpop.eup %3044 }
 0xca1   :  { %1565 = vrot.lane.b32.xlu1 %v3045_v60, %s3198_s15 }
 0xca5   :  { %1570 = vrot.lane.b32.xlu1 %v3045_v60, %s3205_s0  ;;  %v2939_v60 = vld [vmem:[%s4281_s9 + $0x8] sm:$0xff]  }
 0xcf7   :  { %v1509_v59 = vpop.permute.xlu0 %1508 }
 0xcf8   :  { %v1510_v47 = vmul.f32 %v1509_v59, %v1496_v14  ;;  %v2940_v59 = vld [vmem:[%s4281_s9 + $0x50] sm:$0xff]  }
 0xcfa   :  { %v1511_v49 = vadd.f32 %v1510_v47, %v1455_v17  ;;  %v2941_v47 = vld [vmem:[%s4281_s9 + $0x10] sm:$0xff]  }
 0xcfb   :  { %v1514_v56 = vpop.permute.xlu0 %1513 }
 0xcfc   :  { %3046 = vtanh.f32 %v1511_v49  ;;  %v2942_v49 = vld [vmem:[%s4281_s9 + $0x58] sm:$0xff]  }
 0xd06   :  { %v3047_v9 = vpop.eup %3046 }
 0xd07   :  { %v1515_v53 = vsub.f32 %v4087_v1, %v3047_v9 }
 0xd09   :  { %v1516_v10 = vmul.f32 %v1515_v53, %v1514_v56  ;;  %v2944_v53 = vld [vmem:[%s4281_s9 + $0x60] sm:$0xff]  }
 0xd0a   :  { %v2945_v56 = vld [vmem:[%s4281_s9 + $0x20] sm:$0xff]  }
 0xd0b   :  { %v4154_v8 = vadd.f32 %v3047_v9, %v1516_v10  ;;  %v2943_v9 = vld [vmem:[%s4281_s9 + $0x18] sm:$0xff]   ;;  %v2946_v10 = vld [vmem:[%s4281_s9 + $0x68] sm:$0xff]  }
 0xd0d   :  { %v1616_v42 = vpack.c.bf16 %v4154_v8, %v4154_v8 }
 0xd0f   :  { %2874 = vmatmul.mubr.bf16.vlgmr.msra.gmra.mrb[52].mxu0 %v1616_v42  ;;  %v2947_v42 = vld [vmem:[%s4281_s9 + $0x28] sm:$0xff]  }
 0xd10   :  { %2893 = vmatprep.mubr.msk.bf16.mxu0 %vm3203_vm0, %v3202_v0 }
 0xd13   :  { %v1566_v31 = vpop.permute.xlu1 %1565 }
 0xd14   :  { %v1567_v12 = vmul.f32 %v1566_v31, %v1553_v28  ;;  %v2948_v31 = vld [vmem:[%s4281_s9 + $0x70] sm:$0xff]  }
 0xd16   :  { %v1568_v57 = vadd.f32 %v1567_v12, %v211_v38  ;;  %v2949_v12 = vld [vmem:[%s4281_s9 + $0x30] sm:$0xff]  }
 0xd17   :  { %v1571_v20 = vpop.permute.xlu1 %1570 }
 0xd18   :  { %3048 = vtanh.f32 %v1568_v57  ;;  %v2950_v57 = vld [vmem:[%s4281_s9 + $0x78] sm:$0xff]  }
 0xd22   :  { %v3049_v18 = vpop.eup %3048 }
 0xd23   :  { %v1572_v52 = vsub.f32 %v4083_v2, %v3049_v18 }
 0xd25   :  { %v1573_v5 = vmul.f32 %v1572_v52, %v1571_v20  ;;  %v2952_v52 = vld [vmem:[%s4282_s10] sm:$0xff]   ;;  %v2953_v20 = vld [vmem:[%s4282_s10 + $0x8] sm:$0xff]  }
 0xd26   :  { %2878 = vmatpush3.bf16.msra.mxu0 %v2952_v52 }
 0xd27   :  { %v1574_v50 = vadd.f32 %v3049_v18, %v1573_v5  ;;  %v2951_v18 = vld [vmem:[%s4281_s9 + $0x38] sm:$0xff]   ;;  %2879 = vmatprep.subr.bf16.mxu0 %v3202_v0  ;;  %v2954_v5 = vld [vmem:[%s4282_s10 + $0x10] sm:$0xff]  }
 0xd29   :  { %v1575_v6 = vpack.c.bf16 %v1574_v50, %v1574_v50  ;;  %v2955_v50 = vld [vmem:[%s4282_s10 + $0x18] sm:$0xff]  }
 0xd2a   :  { %2880 = vmatpush3.bf16.msra.mxu0 %v2953_v20 }
 0xd2b   :  { %2854 = vmatmul.mubr.bf16.vlgmr.msra.gmra.mrb[44].mxu1 %v1575_v6  ;;  %2881 = vmatprep.subr.bf16.mxu0 %v3202_v0  ;;  %v2956_v6 = vld [vmem:[%s4282_s10 + $0x20] sm:$0xff]  }
 0xd2c   :  { %2357 = vmatpush3.bf16.msra.mxu1 %v2937_v48 }
 0xd2d   :  { %2358 = vmatprep.subr.bf16.mxu1 %v2938_v62 }
 0xd2e   :  { %2882 = vmatpush3.bf16.msra.mxu0 %v2954_v5 }
 0xd2f   :  { %2883 = vmatprep.subr.bf16.mxu0 %v3202_v0 }
 0xd30   :  { %2359 = vmatpush3.bf16.msra.mxu1 %v2939_v60 }
 0xd31   :  { %2360 = vmatprep.subr.bf16.mxu1 %v2940_v59 }
 0xd32   :  { %2884 = vmatpush3.bf16.msra.mxu0 %v2955_v50 }
 0xd33   :  { %2885 = vmatprep.subr.bf16.mxu0 %v3202_v0 }
 0xd34   :  { %2361 = vmatpush3.bf16.msra.mxu1 %v2941_v47 }
 0xd35   :  { %2362 = vmatprep.subr.bf16.mxu1 %v2942_v49 }
 0xd36   :  { %2886 = vmatpush3.bf16.msra.mxu0 %v2956_v6 }
 0xd37   :  { %2887 = vmatprep.subr.bf16.mxu0 %v3202_v0 }
 0xd38   :  { %2363 = vmatpush3.bf16.msra.mxu1 %v2943_v9 }
 0xd39   :  { %2364 = vmatprep.subr.bf16.mxu1 %v2944_v53 }
 0xd3c   :  { %2365 = vmatpush3.bf16.msra.mxu1 %v2945_v56 }
 0xd3d   :  { %2366 = vmatprep.subr.bf16.mxu1 %v2946_v10 }
 0xd40   :  { %2367 = vmatpush3.bf16.msra.mxu1 %v2947_v42 }
 0xd41   :  { %2368 = vmatprep.subr.bf16.mxu1 %v2948_v31 }
 0xd44   :  { %2369 = vmatpush3.bf16.msra.mxu1 %v2949_v12 }
 0xd45   :  { %2370 = vmatprep.subr.bf16.mxu1 %v2950_v57 }
 0xd48   :  { %2371 = vmatpush3.bf16.msra.mxu1 %v2951_v18 }
 0xde2   :  { %v1651_v51 = vpop.f32.mrb[52].mxu0 }
 0xde3   :  { %v2875_v54 = vpop.f32.mrb[53].mxu0  ;;  %v1652_v21 = vadd.f32 %v4068_v58, %v1651_v51  ;;  %v1674_v58 = vlaneseq  ;;  %v2957_v51 = vld [vmem:[%s4282_s10 + $0x28] sm:$0xff]  }
 0xde4   :  { %v1654_v22 = vpop.f32.mrb[54].mxu0  ;;  %2888 = vmatpush3.bf16.msra.mxu0 %v2957_v51 }
 0xde5   :  { %v2876_v23 = vpop.f32.mrb[55].mxu0  ;;  %2889 = vmatprep.subr.bf16.mxu0 %v3202_v0 }
 0xdfe   :  { %v1610_v61 = vpop.f32.mrb[44].mxu1 }
 0xdff   :  { %v1611_v3 = vadd.f32 %v4071_v63, %v1610_v61  ;;  %v2855_v7 = vpop.f32.mrb[45].mxu1  ;;  %v1675_v63 = vand.u32 127, %v1674_v58 }
 0xe00   :  { %v1613_v33 = vpop.f32.mrb[46].mxu1 }
 0xe01   :  { %v1657_v30 = vadd.f32 %v1652_v21, %v1611_v3  ;;  %v2856_v19 = vpop.f32.mrb[47].mxu1  ;;  %vm1676_vm2 = vcmp.ge.s32.totalorder %v1675_v63, 64  ;;  %vm1677_vm3 = vcmp.lt.s32.totalorder %v1675_v63, 96 }
 0xe02   :  { %vm1678_vm4 = vmand %vm1676_vm2, %vm1677_vm3 }
 0xe03   :  { %v2109_v25 = vmul.f32 -1.442695, %v1657_v30 }
 0xe05   :  { %3050 = vpow2.f32 %v2109_v25 }
 0xe0f   :  { %v3051_v2 = vpop.eup %3050 }
 0xe10   :  { %v1661_v27 = vadd.f32 1.0, %v3051_v2 }
 0xe12   :  { %3052 = vrcp.f32 %v1661_v27 }
 0xe1c   :  { %v3053_v13 = vpop.eup %3052 }
 0xe1d   :  { %1669 = vrot.lane.b32.xlu1 %v3053_v13, %s3205_s0  ;;  %1664 = vrot.lane.b32.xlu0 %v3053_v13, %s3198_s15 }
 0xe8f   :  { %v1665_v15 = vpop.permute.xlu0 %1664  ;;  %v1670_v36 = vpop.permute.xlu1 %1669 }
 0xe90   :  { %v1666_v17 = vmul.f32 %v1665_v15, %v1652_v21 }
 0xe92   :  { %v1667_v14 = vadd.f32 %v1666_v17, %v1611_v3 }
 0xe94   :  { %3054 = vtanh.f32 %v1667_v14 }
 0xe9e   :  { %v3055_v16 = vpop.eup %3054 }
 0xe9f   :  { %v1671_v32 = vsub.f32 %v4154_v8, %v3055_v16 }
 0xea1   :  { %v1672_v35 = vmul.f32 %v1671_v32, %v1670_v36 }
 0xea3   :  { %v4166_v37 = vadd.f32 %v3055_v16, %v1672_v35 }
 0xea5   :  { %v1767_v40 = vpack.c.bf16 %v4166_v37, %v4166_v37  ;;  %v1679_v44 = vsel %vm1678_vm4, %v4166_v37, 0.0 }
 0xea6   :  { %v1683_v46 = vmul.f32 %v1679_v44, %v3685_v4  ;;  %v1680_v38 = vmul.f32 %v1679_v44, %v3607_v29  ;;  %v1692_v28 = vmul.f32 %v1679_v44, %v3981_v24  ;;  %v1686_v34 = vmul.f32 %v1679_v44, %v3758_v26 }
 0xea7   :  { %1928 = vmatprep.mubr.bf16.mxu1 %v1767_v40  ;;  %v1698_v55 = vmul.f32 %v1679_v44, %v4154_v8  ;;  %v1689_v39 = vmul.f32 %v1679_v44, %v3861_v11  ;;  %v1695_v41 = vmul.f32 %v1679_v44, %v4087_v1  ;;  %v1701_v43 = vmul.f32 %v1679_v44, %v4166_v37 }
 0xea8   :  { %1684 = vadd.xlane.f32.xlu1 %v1683_v46  ;;  %1681 = vadd.xlane.f32.xlu0 %v1680_v38 }
 0xeac   :  { %1693 = vadd.xlane.f32.xlu1 %v1692_v28  ;;  %1687 = vadd.xlane.f32.xlu0 %v1686_v34 }
 0xeb0   :  { %1699 = vadd.xlane.f32.xlu1 %v1698_v55  ;;  %1690 = vadd.xlane.f32.xlu0 %v1689_v39 }
 0xeb4   :  { %1696 = vadd.xlane.f32.xlu0 %v1695_v41 }
 0xeb8   :  { %1702 = vadd.xlane.f32.xlu0 %v1701_v43 }
 0xf35   :  { %v1682_v54 = vpop.xlane.xlu0 %1681  ;;  %v1685_v22 = vpop.xlane.xlu1 %1684 }
 0xf36   :  { %v1704_v19 = vmax.f32 %v1682_v54, %v1685_v22 }
 0xf39   :  { %v1688_v23 = vpop.xlane.xlu0 %1687  ;;  %v1694_v21 = vpop.xlane.xlu1 %1693 }
 0xf3d   :  { %v1691_v61 = vpop.xlane.xlu0 %1690  ;;  %v1700_v33 = vpop.xlane.xlu1 %1699 }
 0xf3e   :  { %v1705_v7 = vmax.f32 %v1688_v23, %v1691_v61 }
 0xf40   :  { %v1708_v27 = vmax.f32 %v1704_v19, %v1705_v7 }
 0xf41   :  { %v1697_v3 = vpop.xlane.xlu0 %1696 }
 0xf42   :  { %v1706_v25 = vmax.f32 %v1694_v21, %v1697_v3 }
 0xf45   :  { %v1703_v30 = vpop.xlane.xlu0 %1702 }
 0xf46   :  { %v1707_v2 = vmax.f32 %v1700_v33, %v1703_v30 }
 0xf48   :  { %v1709_v13 = vmax.f32 %v1706_v25, %v1707_v2 }
 0xf4a   :  { %v1710_v15 = vmax.f32 %v1708_v27, %v1709_v13 }
 0xf4c   :  { %v1711_v17 = vsub.f32 %v1682_v54, %v1710_v15  ;;  %v1714_v14 = vsub.f32 %v1685_v22, %v1710_v15  ;;  %v1717_v58 = vsub.f32 %v1688_v23, %v1710_v15  ;;  %v1720_v63 = vsub.f32 %v1691_v61, %v1710_v15 }
 0xf4d   :  { %v1723_v16 = vsub.f32 %v1694_v21, %v1710_v15  ;;  %v1726_v32 = vsub.f32 %v1697_v3, %v1710_v15  ;;  %v1729_v44 = vsub.f32 %v1700_v33, %v1710_v15  ;;  %v1732_v38 = vsub.f32 %v1703_v30, %v1710_v15 }
 0xf4e   :  { %v1712_v36 = vmul.f32 1.442695, %v1711_v17  ;;  %v1715_v35 = vmul.f32 1.442695, %v1714_v14  ;;  %v1718_v40 = vmul.f32 1.442695, %v1717_v58 }
 0xf4f   :  { %v1721_v46 = vmul.f32 1.442695, %v1720_v63  ;;  %v1724_v28 = vmul.f32 1.442695, %v1723_v16  ;;  %v1727_v34 = vmul.f32 1.442695, %v1726_v32 }
 0xf50   :  { %3056 = vpow2.f32 %v1712_v36  ;;  %v1730_v55 = vmul.f32 1.442695, %v1729_v44  ;;  %v1733_v39 = vmul.f32 1.442695, %v1732_v38  ;;  %v2126_v58 = vld [vmem:[%s4283_s11] ss:$0 sm:$0xff] }
 0xf51   :  { %3058 = vpow2.f32 %v1715_v35 }
 0xf52   :  { %3060 = vpow2.f32 %v1718_v40 }
 0xf53   :  { %3062 = vpow2.f32 %v1721_v46 }
 0xf54   :  { %3064 = vpow2.f32 %v1724_v28 }
 0xf55   :  { %3066 = vpow2.f32 %v1727_v34 }
 0xf56   :  { %3068 = vpow2.f32 %v1730_v55 }
 0xf57   :  { %3070 = vpow2.f32 %v1733_v39 }
 0xf5a   :  { %v3057_v41 = vpop.eup %3056 }
 0xf5b   :  { %v3059_v43 = vpop.eup %3058 }
 0xf5c   :  { %v3061_v45 = vpop.eup %3060  ;;  %v1735_v60 = vadd.f32 %v3059_v43, %v3057_v41 }
 0xf5d   :  { %v3063_v48 = vpop.eup %3062 }
 0xf5e   :  { %v3065_v62 = vpop.eup %3064  ;;  %v1736_v59 = vadd.f32 %v3063_v48, %v3061_v45 }
 0xf5f   :  { %v3067_v47 = vpop.eup %3066 }
 0xf60   :  { %v3069_v49 = vpop.eup %3068  ;;  %v1737_v9 = vadd.f32 %v3067_v47, %v3065_v62  ;;  %v1739_v10 = vadd.f32 %v1736_v59, %v1735_v60 }
 0xf61   :  { %v3071_v53 = vpop.eup %3070 }
 0xf62   :  { %v1738_v56 = vadd.f32 %v3071_v53, %v3069_v49 }
 0xf64   :  { %v1740_v42 = vadd.f32 %v1738_v56, %v1737_v9 }
 0xf66   :  { %v1741_v31 = vadd.f32 %v1740_v42, %v1739_v10 }
 0xf68   :  { %3072 = vrcp.f32 %v1741_v31 }
 0xf72   :  { %v3073_v12 = vpop.eup %3072 }
 0xf73   :  { %v1757_v57 = vmul.f32 %v3073_v12, %v3071_v53  ;;  %v1743_v18 = vmul.f32 %v3073_v12, %v3057_v41  ;;  %v1745_v52 = vmul.f32 %v3073_v12, %v3059_v43  ;;  %v1747_v20 = vmul.f32 %v3073_v12, %v3061_v45 }
 0xf74   :  { %v1749_v5 = vmul.f32 %v3073_v12, %v3063_v48  ;;  %v1751_v50 = vmul.f32 %v3073_v12, %v3065_v62  ;;  %v1753_v6 = vmul.f32 %v3073_v12, %v3067_v47  ;;  %v1755_v51 = vmul.f32 %v3073_v12, %v3069_v49 }
 0xf75   :  { %v1744_v54 = vmul.f32 %v1743_v18, %v3607_v29  ;;  %v1746_v22 = vmul.f32 %v1745_v52, %v3685_v4  ;;  %v1748_v23 = vmul.f32 %v1747_v20, %v3758_v26  ;;  %v1758_v61 = vmul.f32 %v1757_v57, %v4166_v37  ;;  %v2958_v26 = vld [vmem:[%s4282_s10 + $0x30] sm:$0xff]  }
 0xf76   :  { %v1750_v21 = vmul.f32 %v1749_v5, %v3861_v11  ;;  %v1752_v3 = vmul.f32 %v1751_v50, %v3981_v24  ;;  %v1754_v7 = vmul.f32 %v1753_v6, %v4087_v1  ;;  %v1756_v33 = vmul.f32 %v1755_v51, %v4154_v8  ;;  %2890 = vmatpush3.bf16.msra.mxu0 %v2958_v26  ;;  %v2959_v11 = vld [vmem:[%s4282_s10 + $0x38] sm:$0xff]  }
 0xf77   :  { %v1759_v30 = vadd.f32 %v1746_v22, %v1744_v54  ;;  %2891 = vmatprep.subr.bf16.mxu0 %v3202_v0 }
 0xf78   :  { %v1760_v19 = vadd.f32 %v1750_v21, %v1748_v23  ;;  %v1761_v25 = vadd.f32 %v1754_v7, %v1752_v3  ;;  %v1762_v2 = vadd.f32 %v1758_v61, %v1756_v33 }
 0xf7a   :  { %v1763_v27 = vadd.f32 %v1760_v19, %v1759_v30  ;;  %v1764_v29 = vadd.f32 %v1762_v2, %v1761_v25  ;;  %2892 = vmatpush3.bf16.msra.mxu0 %v2959_v11 }
 0xf7c   :  { %v1765_v13 = vadd.f32 %v1764_v29, %v1763_v27 }
 0xf7e   :  { %v1766_v4 = vpack.c.bf16 %v1765_v13, %v1765_v13 }
 0xf80   :  { %1929 = vmatmul.mubr.bf16.vlgmr.msra.gmra.mrb[48].mxu1 %v1766_v4 }
0x1053   :  { %v2372_v24 = vpop.f32.mrb[48].mxu1 }
0x1054   :  { %v2373_v1 = vpop.f32.mrb[49].mxu1 }
0x1055   :  { %v2374_v8 = vadd.f32 %v2373_v1, %v2372_v24  ;;  %v2375_v37 = vpop.f32.mrb[50].mxu1 }
0x1056   :  { %v2376_v15 = vpop.f32.mrb[51].mxu1 }
0x1057   :  { %v1936_v17 = vmax.f32 %v2374_v8, 0.0 }
0x1059   :  { %v1937_v14 = vpack.c.bf16 %v1936_v17, %v1936_v17 }
0x105b   :  { %2894 = vmatmul.mubr.bf16.vlgmr.msra.gmra.mrb[56].mxu0 %v1937_v14 }
0x112e   :  { %v2043_v63 = vpop.f32.mrb[56].mxu0 }
0x112f   :  { %v2044_v16 = vadd.f32 %v2126_v58, %v2043_v63  ;;  %v2895_v0 = vpop.f32.mrb[57].mxu0 }
0x1130   :  { %v2046_v32 = vpop.f32.mrb[58].mxu0 }
0x1131   :  { %2049 = vst [vmem:[%s4284_s12] sm:$0xff] %v2044_v16  ;;  %v2896_v36 = vpop.f32.mrb[59].mxu0 }
0x1132   :  { %2054 = vsyncpa [#allocation3], 1 }
0x1133   :  { %2055 = vsyncpa [#allocation5], 1 }
0x1134   :  { %2056 = vsyncpa [#allocation8], 1 }

</bundles_post_ra>
